<compile_context>
chip_gen: v6e
topology: v6e:2x2x1
jax: 0.10.0
libtpu: 0.0.40
codegen_flags: <defaults>
</compile_context>

<pallas_src>
import functools

import jax
import jax.numpy as jnp
from jax.experimental import pallas as pl
from jax.experimental.pallas import tpu as pltpu


_MAX_UNROLL_STEPS = 16   # fully unroll the recurrence for short sequences


def _lstm_kernel(x_ref, w_in_ref, w_rec_ref, b_ref, wfc_ref, bfc_ref, out_ref,
                 gx_ref, *, seq_len, batch, hidden):
    T, B, H = seq_len, batch, hidden

    # ---- Phase 0 (off the serial path): static projection for every timestep.
    # ((T+1)*B, D) @ (D, 8H).  Layer-2 columns of w_in are zero, so those lanes
    # carry only the broadcast layer-2 bias; the trailing zero timestep yields a
    # pure-bias row consumed by the skew epilogue iteration.
    gx_ref[...] = (
        jnp.dot(x_ref[...], w_in_ref[...], preferred_element_type=jnp.float32)
        + b_ref[...])

    w_rec = w_rec_ref[...]          # (2H, 8H): rows 0:H -> [whh1|wih2], rows H:2H -> [0|whh2]

    def cell_step(gx_rows, hcat, ccat):
        # One fused MXU issue per step covering both layers' gates.
        g = gx_rows + jnp.dot(hcat, w_rec, preferred_element_type=jnp.float32)
        s = jax.nn.sigmoid(g)                     # single full-(B,8H) activation
        i = s[:, 0 * H:2 * H]                     # [i1 | i2]
        f = s[:, 2 * H:4 * H]                     # [f1 | f2]
        gg = 2.0 * s[:, 4 * H:6 * H] - 1.0        # [g1 | g2] == tanh (g cols pre-scaled x2)
        o = s[:, 6 * H:8 * H]                     # [o1 | o2]
        ccat = f * ccat + i * gg
        hcat = o * jnp.tanh(ccat)
        return hcat, ccat

    # ---- Skew prologue (iteration 0): layer-1 step 0 from the all-zero state
    # (no recurrent matmul needed); the layer-2 half of the packed update is
    # forced back to its true zero initial value with a hoisted lane mask.
    l1_mask = (jax.lax.broadcasted_iota(jnp.int32, (B, 2 * H), 1) < H).astype(
        jnp.float32)
    s0 = jax.nn.sigmoid(gx_ref[pl.ds(0, B), :])
    ccat = (s0[:, 0:2 * H] * (2.0 * s0[:, 4 * H:6 * H] - 1.0)) * l1_mask
    hcat = s0[:, 6 * H:8 * H] * jnp.tanh(ccat)    # layer-2 half is o*tanh(0) = 0

    # ---- Skewed recurrence: iteration s computes layer-1 step s and layer-2
    # step s-1 (independent chains).  Iteration s == T only produces layer-2's
    # final step; its layer-1 half is a harmless bias-only update that nothing
    # reads (the padded FC weight has zero rows for that half).
    if T <= _MAX_UNROLL_STEPS:
        for s in range(1, T + 1):
            hcat, ccat = cell_step(gx_ref[pl.ds(s * B, B), :], hcat, ccat)
    else:
        # Large-T path: carried-vreg fori_loop keeps live ranges bounded.
        def body(s, carry):
            hcat, ccat = carry
            row = s * B
            if B % 8 == 0:
                row = pl.multiple_of(row, 8)
            return cell_step(gx_ref[pl.ds(row, B), :], hcat, ccat)
        hcat, ccat = jax.lax.fori_loop(1, T + 1, body, (hcat, ccat), unroll=2)

    # ---- FC head, exactly once (== Linear(output[:, -1, :])).  Dropout(p=0)
    # is the identity.  wfc is padded with zero rows for the layer-1 half.
    out_ref[...] = (
        jnp.dot(hcat, wfc_ref[...], preferred_element_type=jnp.float32)
        + bfc_ref[...])


def _pack_params(params, hidden):
    """Build the packed/fused weights used by the kernel.

    Packed gate-column layout (width 8H): [i1,i2, f1,f2, g1,g2, o1,o2] — the two
    layers' gates are interleaved so each gate pair is lane-contiguous and the
    packed states [h1|h2], [c1|c2] need no in-loop concatenation.  The g-gate
    columns are pre-scaled by 2 (tanh(z) = 2*sigmoid(2z) - 1) so the kernel only
    evaluates sigmoid on gate pre-activations.
    """
    wih1, whh1, b1, wih2, whh2, b2, wfc, bfc = params
    H = hidden
    O = wfc.shape[1]

    def place(w, layer):
        # Scatter a (R, 4H) [i,f,g,o] gate matrix into the packed 8H layout.
        out = jnp.zeros((w.shape[0], 8 * H), w.dtype)
        for gidx in range(4):                      # PyTorch gate order i, f, g, o
            dst = (2 * gidx + layer) * H
            out = out.at[:, dst:dst + H].set(w[:, gidx * H:(gidx + 1) * H])
        return out

    def scale_g(w):                                # x2 on the g-gate columns
        return w.at[:, 4 * H:6 * H].multiply(2.0)

    w_in = scale_g(place(wih1, 0))                              # (D, 8H)
    b_full = scale_g(place(b1, 0) + place(b2, 1))               # (1, 8H)
    w_rec = scale_g(jnp.concatenate(
        [place(whh1, 0) + place(wih2, 1),                       # rows 0:H  (x h1)
         place(whh2, 1)], axis=0))                              # rows H:2H (x h2)
    wfc_pad = jnp.concatenate(
        [jnp.zeros((H, O), wfc.dtype), wfc], axis=0)            # (2H, O)
    return w_in, w_rec, b_full, wfc_pad, bfc


def lstm_forward(x, params):
    """x: (B, T, D) float32, batch-first.  Returns (B * output_size, 1)."""
    B, T, D = x.shape
    H = params[1].shape[0]
    w_in, w_rec, b_full, wfc_pad, bfc = _pack_params(params, H)
    O = wfc_pad.shape[1]

    # Time-major rows plus one trailing all-zero timestep; its projected row is
    # just the bias and feeds the skew-epilogue iteration (layer-2's last step).
    # TODO(synk): for production T, replace whole-array VMEM residency and this
    # wrapper transpose with a time-chunked "arbitrary" grid axis / emit_pipeline
    # fetching (T_chunk, B, D) blocks straight from HBM (budget chunks against
    # v7x's 64 MiB VMEM, half of v5e/v6e).
    x_tm = jnp.transpose(x, (1, 0, 2)).reshape(T * B, D)
    x_pad = jnp.concatenate([x_tm, jnp.zeros((B, D), x.dtype)], axis=0)

    kernel = functools.partial(_lstm_kernel, seq_len=T, batch=B, hidden=H)
    vmem = pl.BlockSpec(memory_space=pltpu.MemorySpace.VMEM)

    out = pl.pallas_call(
        kernel,
        out_shape=jax.ShapeDtypeStruct((B, O), jnp.float32),
        in_specs=[vmem] * 6,
        out_specs=vmem,
        scratch_shapes=[pltpu.VMEM(((T + 1) * B, 8 * H), jnp.float32)],
    )(x_pad, w_in, w_rec, b_full, wfc_pad, bfc)

    # TODO(synk): add a "parallel" batch-tile grid axis (>=2 tiles of >=8 rows)
    # to light up v7x's second TensorCore for large B; pure overhead at B=8.
    return out.reshape(-1, 1)


def lstm_ref(x, params):
    """Pure-JAX reference mirroring torch.nn.LSTM(num_layers=2) + Linear."""
    wih1, whh1, b1, wih2, whh2, b2, wfc, bfc = params
    B, T, _ = x.shape
    H = whh1.shape[0]

    def cell(x_t, h, c, wih, whh, b):
        gates = x_t @ wih + h @ whh + b
        i = jax.nn.sigmoid(gates[:, 0 * H:1 * H])
        f = jax.nn.sigmoid(gates[:, 1 * H:2 * H])
        g = jnp.tanh(gates[:, 2 * H:3 * H])
        o = jax.nn.sigmoid(gates[:, 3 * H:4 * H])
        c = f * c + i * g
        h = o * jnp.tanh(c)
        return h, c

    h1 = c1 = h2 = c2 = jnp.zeros((B, H), jnp.float32)
    for t in range(T):
        h1, c1 = cell(x[:, t], h1, c1, wih1, whh1, b1)
        h2, c2 = cell(h1, h2, c2, wih2, whh2, b2)
    out = h2 @ wfc + bfc
    return out.reshape(-1, 1)


def init_params(key, input_size, hidden_size, output_size):
    """Deterministic init matching PyTorch parameter shapes (stored pre-transposed:
    W_ih: (in, 4H), W_hh: (H, 4H), combined bias (1, 4H) == b_ih + b_hh folded;
    Linear W: (H, O), b: (1, O))."""
    H = hidden_size
    k = 1.0 / jnp.sqrt(jnp.float32(H))
    keys = jax.random.split(key, 8)
    u = lambda kk, shape: jax.random.uniform(kk, shape, jnp.float32, -k, k)
    wih1 = u(keys[0], (input_size, 4 * H))
    whh1 = u(keys[1], (H, 4 * H))
    b1 = u(keys[2], (1, 4 * H))
    wih2 = u(keys[3], (H, 4 * H))
    whh2 = u(keys[4], (H, 4 * H))
    b2 = u(keys[5], (1, 4 * H))
    wfc = u(keys[6], (H, output_size))
    bfc = u(keys[7], (1, output_size))
    return (wih1, whh1, b1, wih2, whh2, b2, wfc, bfc)


if __name__ == "__main__":
    B, T = 8, 10                                   # seq_len=10 matches module default
    INPUT_SIZE, HIDDEN_SIZE, OUTPUT_SIZE = 128, 32, 128

    key = jax.random.PRNGKey(0)
    kx, kp = jax.random.split(key)
    x = jax.random.normal(kx, (B, T, INPUT_SIZE), jnp.float32)
    params = init_params(kp, INPUT_SIZE, HIDDEN_SIZE, OUTPUT_SIZE)

    out = jax.block_until_ready(lstm_forward(x, params))
    ref = jax.block_until_ready(lstm_ref(x, params))

    assert out.shape == (B * OUTPUT_SIZE, 1), out.shape
    max_err = float(jnp.max(jnp.abs(out - ref)))
    assert jnp.allclose(out, ref, atol=2e-4, rtol=2e-4), max_err
    print("KERNEL_OK")
</pallas_src>

<mosaic_0001>
module attributes {stable_mosaic.version = 11 : i64} {
  func.func @_lstm_kernel(%arg0: memref<88x128xf32, #tpu.memory_space<vmem>>, %arg1: memref<128x256xf32, #tpu.memory_space<vmem>>, %arg2: memref<64x256xf32, #tpu.memory_space<vmem>>, %arg3: memref<1x256xf32, #tpu.memory_space<vmem>>, %arg4: memref<64x128xf32, #tpu.memory_space<vmem>>, %arg5: memref<1x128xf32, #tpu.memory_space<vmem>>, %arg6: memref<8x128xf32, #tpu.memory_space<vmem>>, %arg7: memref<88x256xf32, #tpu.memory_space<vmem>>) attributes {dimension_semantics = [], scalar_prefetch = 0 : i64, scratch_operands = 1 : i64, tpu.core_type = #tpu.core_type<tc>} {
    %c0 = arith.constant 0 : index
    %c0_0 = arith.constant 0 : index
    %0 = vector.load %arg0[%c0, %c0_0] : memref<88x128xf32, #tpu.memory_space<vmem>>, vector<88x128xf32>
    %c0_1 = arith.constant 0 : index
    %c0_2 = arith.constant 0 : index
    %1 = vector.load %arg1[%c0_1, %c0_2] : memref<128x256xf32, #tpu.memory_space<vmem>>, vector<128x256xf32>
    %cst = arith.constant dense<0.000000e+00> : vector<88x256xf32>
    %2 = tpu.matmul %0, %1, %cst {dimension_numbers = #tpu.dot_dimension_numbers<[1], [0], [0], [1], [0, 0, 1, 1], [], []>} : vector<88x128xf32>, vector<128x256xf32>, vector<88x256xf32> -> vector<88x256xf32>
    %c0_3 = arith.constant 0 : index
    %c0_4 = arith.constant 0 : index
    %3 = vector.load %arg3[%c0_3, %c0_4] : memref<1x256xf32, #tpu.memory_space<vmem>>, vector<1x256xf32>
    %4 = vector.broadcast %3 : vector<1x256xf32> to vector<88x256xf32>
    %5 = arith.addf %2, %4 : vector<88x256xf32>
    %c0_5 = arith.constant 0 : index
    %c0_6 = arith.constant 0 : index
    %6 = vector.load %arg7[%c0_5, %c0_6] : memref<88x256xf32, #tpu.memory_space<vmem>>, vector<88x256xf32>
    tpu.vector_store %arg7[%c0_5, %c0_6], %5 {strides = array<i32>} : memref<88x256xf32, #tpu.memory_space<vmem>>, vector<88x256xf32>,
    %c0_7 = arith.constant 0 : index
    %c0_8 = arith.constant 0 : index
    %7 = vector.load %arg2[%c0_7, %c0_8] : memref<64x256xf32, #tpu.memory_space<vmem>>, vector<64x256xf32>
    %8 = tpu.iota {dimensions = array<i32: 1>} : vector<8x64xi32>
    %c32_i32 = arith.constant 32 : i32
    %9 = vector.broadcast %c32_i32 : i32 to vector<8x64xi32>
    %10 = arith.cmpi slt, %8, %9 : vector<8x64xi32>
    %11 = arith.extui %10 : vector<8x64xi1> to vector<8x64xi32>
    %12 = arith.sitofp %11 : vector<8x64xi32> to vector<8x64xf32>
    %c0_9 = arith.constant 0 : index
    %c0_10 = arith.constant 0 : index
    %13 = vector.load %arg7[%c0_9, %c0_10] : memref<88x256xf32, #tpu.memory_space<vmem>>, vector<8x256xf32>
    %14 = arith.negf %13 : vector<8x256xf32>
    %15 = math.exp %14 : vector<8x256xf32>
    %cst_11 = arith.constant 1.000000e+00 : f32
    %16 = vector.broadcast %cst_11 : f32 to vector<8x256xf32>
    %17 = arith.addf %16, %15 : vector<8x256xf32>
    %18 = arith.divf %16, %17 : vector<8x256xf32>
    %19 = vector.extract_strided_slice %18 {offsets = [0, 0], sizes = [8, 64], strides = [1, 1]} : vector<8x256xf32> to vector<8x64xf32>
    %20 = vector.extract_strided_slice %18 {offsets = [0, 128], sizes = [8, 64], strides = [1, 1]} : vector<8x256xf32> to vector<8x64xf32>
    %cst_12 = arith.constant 2.000000e+00 : f32
    %21 = vector.broadcast %cst_12 : f32 to vector<8x64xf32>
    %22 = arith.mulf %21, %20 : vector<8x64xf32>
    %cst_13 = arith.constant 1.000000e+00 : f32
    %23 = vector.broadcast %cst_13 : f32 to vector<8x64xf32>
    %24 = arith.subf %22, %23 : vector<8x64xf32>
    %25 = arith.mulf %19, %24 : vector<8x64xf32>
    %26 = arith.mulf %25, %12 : vector<8x64xf32>
    %27 = vector.extract_strided_slice %18 {offsets = [0, 192], sizes = [8, 64], strides = [1, 1]} : vector<8x256xf32> to vector<8x64xf32>
    %28 = math.tanh %26 : vector<8x64xf32>
    %29 = arith.mulf %27, %28 : vector<8x64xf32>
    %c8 = arith.constant 8 : index
    %c0_14 = arith.constant 0 : index
    %30 = vector.load %arg7[%c8, %c0_14] : memref<88x256xf32, #tpu.memory_space<vmem>>, vector<8x256xf32>
    %cst_15 = arith.constant dense<0.000000e+00> : vector<8x256xf32>
    %31 = tpu.matmul %29, %7, %cst_15 {dimension_numbers = #tpu.dot_dimension_numbers<[1], [0], [0], [1], [0, 0, 1, 1], [], []>} : vector<8x64xf32>, vector<64x256xf32>, vector<8x256xf32> -> vector<8x256xf32>
    %32 = arith.addf %30, %31 : vector<8x256xf32>
    %33 = arith.negf %32 : vector<8x256xf32>
    %34 = math.exp %33 : vector<8x256xf32>
    %cst_16 = arith.constant 1.000000e+00 : f32
    %35 = vector.broadcast %cst_16 : f32 to vector<8x256xf32>
    %36 = arith.addf %35, %34 : vector<8x256xf32>
    %37 = arith.divf %35, %36 : vector<8x256xf32>
    %38 = vector.extract_strided_slice %37 {offsets = [0, 0], sizes = [8, 64], strides = [1, 1]} : vector<8x256xf32> to vector<8x64xf32>
    %39 = vector.extract_strided_slice %37 {offsets = [0, 64], sizes = [8, 64], strides = [1, 1]} : vector<8x256xf32> to vector<8x64xf32>
    %40 = vector.extract_strided_slice %37 {offsets = [0, 128], sizes = [8, 64], strides = [1, 1]} : vector<8x256xf32> to vector<8x64xf32>
    %cst_17 = arith.constant 2.000000e+00 : f32
    %41 = vector.broadcast %cst_17 : f32 to vector<8x64xf32>
    %42 = arith.mulf %41, %40 : vector<8x64xf32>
    %cst_18 = arith.constant 1.000000e+00 : f32
    %43 = vector.broadcast %cst_18 : f32 to vector<8x64xf32>
    %44 = arith.subf %42, %43 : vector<8x64xf32>
    %45 = vector.extract_strided_slice %37 {offsets = [0, 192], sizes = [8, 64], strides = [1, 1]} : vector<8x256xf32> to vector<8x64xf32>
    %46 = arith.mulf %39, %26 : vector<8x64xf32>
    %47 = arith.mulf %38, %44 : vector<8x64xf32>
    %48 = arith.addf %46, %47 : vector<8x64xf32>
    %49 = math.tanh %48 : vector<8x64xf32>
    %50 = arith.mulf %45, %49 : vector<8x64xf32>
    %c16 = arith.constant 16 : index
    %c0_19 = arith.constant 0 : index
    %51 = vector.load %arg7[%c16, %c0_19] : memref<88x256xf32, #tpu.memory_space<vmem>>, vector<8x256xf32>
    %cst_20 = arith.constant dense<0.000000e+00> : vector<8x256xf32>
    %52 = tpu.matmul %50, %7, %cst_20 {dimension_numbers = #tpu.dot_dimension_numbers<[1], [0], [0], [1], [0, 0, 1, 1], [], []>} : vector<8x64xf32>, vector<64x256xf32>, vector<8x256xf32> -> vector<8x256xf32>
    %53 = arith.addf %51, %52 : vector<8x256xf32>
    %54 = arith.negf %53 : vector<8x256xf32>
    %55 = math.exp %54 : vector<8x256xf32>
    %cst_21 = arith.constant 1.000000e+00 : f32
    %56 = vector.broadcast %cst_21 : f32 to vector<8x256xf32>
    %57 = arith.addf %56, %55 : vector<8x256xf32>
    %58 = arith.divf %56, %57 : vector<8x256xf32>
    %59 = vector.extract_strided_slice %58 {offsets = [0, 0], sizes = [8, 64], strides = [1, 1]} : vector<8x256xf32> to vector<8x64xf32>
    %60 = vector.extract_strided_slice %58 {offsets = [0, 64], sizes = [8, 64], strides = [1, 1]} : vector<8x256xf32> to vector<8x64xf32>
    %61 = vector.extract_strided_slice %58 {offsets = [0, 128], sizes = [8, 64], strides = [1, 1]} : vector<8x256xf32> to vector<8x64xf32>
    %cst_22 = arith.constant 2.000000e+00 : f32
    %62 = vector.broadcast %cst_22 : f32 to vector<8x64xf32>
    %63 = arith.mulf %62, %61 : vector<8x64xf32>
    %cst_23 = arith.constant 1.000000e+00 : f32
    %64 = vector.broadcast %cst_23 : f32 to vector<8x64xf32>
    %65 = arith.subf %63, %64 : vector<8x64xf32>
    %66 = vector.extract_strided_slice %58 {offsets = [0, 192], sizes = [8, 64], strides = [1, 1]} : vector<8x256xf32> to vector<8x64xf32>
    %67 = arith.mulf %60, %48 : vector<8x64xf32>
    %68 = arith.mulf %59, %65 : vector<8x64xf32>
    %69 = arith.addf %67, %68 : vector<8x64xf32>
    %70 = math.tanh %69 : vector<8x64xf32>
    %71 = arith.mulf %66, %70 : vector<8x64xf32>
    %c24 = arith.constant 24 : index
    %c0_24 = arith.constant 0 : index
    %72 = vector.load %arg7[%c24, %c0_24] : memref<88x256xf32, #tpu.memory_space<vmem>>, vector<8x256xf32>
    %cst_25 = arith.constant dense<0.000000e+00> : vector<8x256xf32>
    %73 = tpu.matmul %71, %7, %cst_25 {dimension_numbers = #tpu.dot_dimension_numbers<[1], [0], [0], [1], [0, 0, 1, 1], [], []>} : vector<8x64xf32>, vector<64x256xf32>, vector<8x256xf32> -> vector<8x256xf32>
    %74 = arith.addf %72, %73 : vector<8x256xf32>
    %75 = arith.negf %74 : vector<8x256xf32>
    %76 = math.exp %75 : vector<8x256xf32>
    %cst_26 = arith.constant 1.000000e+00 : f32
    %77 = vector.broadcast %cst_26 : f32 to vector<8x256xf32>
    %78 = arith.addf %77, %76 : vector<8x256xf32>
    %79 = arith.divf %77, %78 : vector<8x256xf32>
    %80 = vector.extract_strided_slice %79 {offsets = [0, 0], sizes = [8, 64], strides = [1, 1]} : vector<8x256xf32> to vector<8x64xf32>
    %81 = vector.extract_strided_slice %79 {offsets = [0, 64], sizes = [8, 64], strides = [1, 1]} : vector<8x256xf32> to vector<8x64xf32>
    %82 = vector.extract_strided_slice %79 {offsets = [0, 128], sizes = [8, 64], strides = [1, 1]} : vector<8x256xf32> to vector<8x64xf32>
    %cst_27 = arith.constant 2.000000e+00 : f32
    %83 = vector.broadcast %cst_27 : f32 to vector<8x64xf32>
    %84 = arith.mulf %83, %82 : vector<8x64xf32>
    %cst_28 = arith.constant 1.000000e+00 : f32
    %85 = vector.broadcast %cst_28 : f32 to vector<8x64xf32>
    %86 = arith.subf %84, %85 : vector<8x64xf32>
    %87 = vector.extract_strided_slice %79 {offsets = [0, 192], sizes = [8, 64], strides = [1, 1]} : vector<8x256xf32> to vector<8x64xf32>
    %88 = arith.mulf %81, %69 : vector<8x64xf32>
    %89 = arith.mulf %80, %86 : vector<8x64xf32>
    %90 = arith.addf %88, %89 : vector<8x64xf32>
    %91 = math.tanh %90 : vector<8x64xf32>
    %92 = arith.mulf %87, %91 : vector<8x64xf32>
    %c32 = arith.constant 32 : index
    %c0_29 = arith.constant 0 : index
    %93 = vector.load %arg7[%c32, %c0_29] : memref<88x256xf32, #tpu.memory_space<vmem>>, vector<8x256xf32>
    %cst_30 = arith.constant dense<0.000000e+00> : vector<8x256xf32>
    %94 = tpu.matmul %92, %7, %cst_30 {dimension_numbers = #tpu.dot_dimension_numbers<[1], [0], [0], [1], [0, 0, 1, 1], [], []>} : vector<8x64xf32>, vector<64x256xf32>, vector<8x256xf32> -> vector<8x256xf32>
    %95 = arith.addf %93, %94 : vector<8x256xf32>
    %96 = arith.negf %95 : vector<8x256xf32>
    %97 = math.exp %96 : vector<8x256xf32>
    %cst_31 = arith.constant 1.000000e+00 : f32
    %98 = vector.broadcast %cst_31 : f32 to vector<8x256xf32>
    %99 = arith.addf %98, %97 : vector<8x256xf32>
    %100 = arith.divf %98, %99 : vector<8x256xf32>
    %101 = vector.extract_strided_slice %100 {offsets = [0, 0], sizes = [8, 64], strides = [1, 1]} : vector<8x256xf32> to vector<8x64xf32>
    %102 = vector.extract_strided_slice %100 {offsets = [0, 64], sizes = [8, 64], strides = [1, 1]} : vector<8x256xf32> to vector<8x64xf32>
    %103 = vector.extract_strided_slice %100 {offsets = [0, 128], sizes = [8, 64], strides = [1, 1]} : vector<8x256xf32> to vector<8x64xf32>
    %cst_32 = arith.constant 2.000000e+00 : f32
    %104 = vector.broadcast %cst_32 : f32 to vector<8x64xf32>
    %105 = arith.mulf %104, %103 : vector<8x64xf32>
    %cst_33 = arith.constant 1.000000e+00 : f32
    %106 = vector.broadcast %cst_33 : f32 to vector<8x64xf32>
    %107 = arith.subf %105, %106 : vector<8x64xf32>
    %108 = vector.extract_strided_slice %100 {offsets = [0, 192], sizes = [8, 64], strides = [1, 1]} : vector<8x256xf32> to vector<8x64xf32>
    %109 = arith.mulf %102, %90 : vector<8x64xf32>
    %110 = arith.mulf %101, %107 : vector<8x64xf32>
    %111 = arith.addf %109, %110 : vector<8x64xf32>
    %112 = math.tanh %111 : vector<8x64xf32>
    %113 = arith.mulf %108, %112 : vector<8x64xf32>
    %c40 = arith.constant 40 : index
    %c0_34 = arith.constant 0 : index
    %114 = vector.load %arg7[%c40, %c0_34] : memref<88x256xf32, #tpu.memory_space<vmem>>, vector<8x256xf32>
    %cst_35 = arith.constant dense<0.000000e+00> : vector<8x256xf32>
    %115 = tpu.matmul %113, %7, %cst_35 {dimension_numbers = #tpu.dot_dimension_numbers<[1], [0], [0], [1], [0, 0, 1, 1], [], []>} : vector<8x64xf32>, vector<64x256xf32>, vector<8x256xf32> -> vector<8x256xf32>
    %116 = arith.addf %114, %115 : vector<8x256xf32>
    %117 = arith.negf %116 : vector<8x256xf32>
    %118 = math.exp %117 : vector<8x256xf32>
    %cst_36 = arith.constant 1.000000e+00 : f32
    %119 = vector.broadcast %cst_36 : f32 to vector<8x256xf32>
    %120 = arith.addf %119, %118 : vector<8x256xf32>
    %121 = arith.divf %119, %120 : vector<8x256xf32>
    %122 = vector.extract_strided_slice %121 {offsets = [0, 0], sizes = [8, 64], strides = [1, 1]} : vector<8x256xf32> to vector<8x64xf32>
    %123 = vector.extract_strided_slice %121 {offsets = [0, 64], sizes = [8, 64], strides = [1, 1]} : vector<8x256xf32> to vector<8x64xf32>
    %124 = vector.extract_strided_slice %121 {offsets = [0, 128], sizes = [8, 64], strides = [1, 1]} : vector<8x256xf32> to vector<8x64xf32>
    %cst_37 = arith.constant 2.000000e+00 : f32
    %125 = vector.broadcast %cst_37 : f32 to vector<8x64xf32>
    %126 = arith.mulf %125, %124 : vector<8x64xf32>
    %cst_38 = arith.constant 1.000000e+00 : f32
    %127 = vector.broadcast %cst_38 : f32 to vector<8x64xf32>
    %128 = arith.subf %126, %127 : vector<8x64xf32>
    %129 = vector.extract_strided_slice %121 {offsets = [0, 192], sizes = [8, 64], strides = [1, 1]} : vector<8x256xf32> to vector<8x64xf32>
    %130 = arith.mulf %123, %111 : vector<8x64xf32>
    %131 = arith.mulf %122, %128 : vector<8x64xf32>
    %132 = arith.addf %130, %131 : vector<8x64xf32>
    %133 = math.tanh %132 : vector<8x64xf32>
    %134 = arith.mulf %129, %133 : vector<8x64xf32>
    %c48 = arith.constant 48 : index
    %c0_39 = arith.constant 0 : index
    %135 = vector.load %arg7[%c48, %c0_39] : memref<88x256xf32, #tpu.memory_space<vmem>>, vector<8x256xf32>
    %cst_40 = arith.constant dense<0.000000e+00> : vector<8x256xf32>
    %136 = tpu.matmul %134, %7, %cst_40 {dimension_numbers = #tpu.dot_dimension_numbers<[1], [0], [0], [1], [0, 0, 1, 1], [], []>} : vector<8x64xf32>, vector<64x256xf32>, vector<8x256xf32> -> vector<8x256xf32>
    %137 = arith.addf %135, %136 : vector<8x256xf32>
    %138 = arith.negf %137 : vector<8x256xf32>
    %139 = math.exp %138 : vector<8x256xf32>
    %cst_41 = arith.constant 1.000000e+00 : f32
    %140 = vector.broadcast %cst_41 : f32 to vector<8x256xf32>
    %141 = arith.addf %140, %139 : vector<8x256xf32>
    %142 = arith.divf %140, %141 : vector<8x256xf32>
    %143 = vector.extract_strided_slice %142 {offsets = [0, 0], sizes = [8, 64], strides = [1, 1]} : vector<8x256xf32> to vector<8x64xf32>
    %144 = vector.extract_strided_slice %142 {offsets = [0, 64], sizes = [8, 64], strides = [1, 1]} : vector<8x256xf32> to vector<8x64xf32>
    %145 = vector.extract_strided_slice %142 {offsets = [0, 128], sizes = [8, 64], strides = [1, 1]} : vector<8x256xf32> to vector<8x64xf32>
    %cst_42 = arith.constant 2.000000e+00 : f32
    %146 = vector.broadcast %cst_42 : f32 to vector<8x64xf32>
    %147 = arith.mulf %146, %145 : vector<8x64xf32>
    %cst_43 = arith.constant 1.000000e+00 : f32
    %148 = vector.broadcast %cst_43 : f32 to vector<8x64xf32>
    %149 = arith.subf %147, %148 : vector<8x64xf32>
    %150 = vector.extract_strided_slice %142 {offsets = [0, 192], sizes = [8, 64], strides = [1, 1]} : vector<8x256xf32> to vector<8x64xf32>
    %151 = arith.mulf %144, %132 : vector<8x64xf32>
    %152 = arith.mulf %143, %149 : vector<8x64xf32>
    %153 = arith.addf %151, %152 : vector<8x64xf32>
    %154 = math.tanh %153 : vector<8x64xf32>
    %155 = arith.mulf %150, %154 : vector<8x64xf32>
    %c56 = arith.constant 56 : index
    %c0_44 = arith.constant 0 : index
    %156 = vector.load %arg7[%c56, %c0_44] : memref<88x256xf32, #tpu.memory_space<vmem>>, vector<8x256xf32>
    %cst_45 = arith.constant dense<0.000000e+00> : vector<8x256xf32>
    %157 = tpu.matmul %155, %7, %cst_45 {dimension_numbers = #tpu.dot_dimension_numbers<[1], [0], [0], [1], [0, 0, 1, 1], [], []>} : vector<8x64xf32>, vector<64x256xf32>, vector<8x256xf32> -> vector<8x256xf32>
    %158 = arith.addf %156, %157 : vector<8x256xf32>
    %159 = arith.negf %158 : vector<8x256xf32>
    %160 = math.exp %159 : vector<8x256xf32>
    %cst_46 = arith.constant 1.000000e+00 : f32
    %161 = vector.broadcast %cst_46 : f32 to vector<8x256xf32>
    %162 = arith.addf %161, %160 : vector<8x256xf32>
    %163 = arith.divf %161, %162 : vector<8x256xf32>
    %164 = vector.extract_strided_slice %163 {offsets = [0, 0], sizes = [8, 64], strides = [1, 1]} : vector<8x256xf32> to vector<8x64xf32>
    %165 = vector.extract_strided_slice %163 {offsets = [0, 64], sizes = [8, 64], strides = [1, 1]} : vector<8x256xf32> to vector<8x64xf32>
    %166 = vector.extract_strided_slice %163 {offsets = [0, 128], sizes = [8, 64], strides = [1, 1]} : vector<8x256xf32> to vector<8x64xf32>
    %cst_47 = arith.constant 2.000000e+00 : f32
    %167 = vector.broadcast %cst_47 : f32 to vector<8x64xf32>
    %168 = arith.mulf %167, %166 : vector<8x64xf32>
    %cst_48 = arith.constant 1.000000e+00 : f32
    %169 = vector.broadcast %cst_48 : f32 to vector<8x64xf32>
    %170 = arith.subf %168, %169 : vector<8x64xf32>
    %171 = vector.extract_strided_slice %163 {offsets = [0, 192], sizes = [8, 64], strides = [1, 1]} : vector<8x256xf32> to vector<8x64xf32>
    %172 = arith.mulf %165, %153 : vector<8x64xf32>
    %173 = arith.mulf %164, %170 : vector<8x64xf32>
    %174 = arith.addf %172, %173 : vector<8x64xf32>
    %175 = math.tanh %174 : vector<8x64xf32>
    %176 = arith.mulf %171, %175 : vector<8x64xf32>
    %c64 = arith.constant 64 : index
    %c0_49 = arith.constant 0 : index
    %177 = vector.load %arg7[%c64, %c0_49] : memref<88x256xf32, #tpu.memory_space<vmem>>, vector<8x256xf32>
    %cst_50 = arith.constant dense<0.000000e+00> : vector<8x256xf32>
    %178 = tpu.matmul %176, %7, %cst_50 {dimension_numbers = #tpu.dot_dimension_numbers<[1], [0], [0], [1], [0, 0, 1, 1], [], []>} : vector<8x64xf32>, vector<64x256xf32>, vector<8x256xf32> -> vector<8x256xf32>
    %179 = arith.addf %177, %178 : vector<8x256xf32>
    %180 = arith.negf %179 : vector<8x256xf32>
    %181 = math.exp %180 : vector<8x256xf32>
    %cst_51 = arith.constant 1.000000e+00 : f32
    %182 = vector.broadcast %cst_51 : f32 to vector<8x256xf32>
    %183 = arith.addf %182, %181 : vector<8x256xf32>
    %184 = arith.divf %182, %183 : vector<8x256xf32>
    %185 = vector.extract_strided_slice %184 {offsets = [0, 0], sizes = [8, 64], strides = [1, 1]} : vector<8x256xf32> to vector<8x64xf32>
    %186 = vector.extract_strided_slice %184 {offsets = [0, 64], sizes = [8, 64], strides = [1, 1]} : vector<8x256xf32> to vector<8x64xf32>
    %187 = vector.extract_strided_slice %184 {offsets = [0, 128], sizes = [8, 64], strides = [1, 1]} : vector<8x256xf32> to vector<8x64xf32>
    %cst_52 = arith.constant 2.000000e+00 : f32
    %188 = vector.broadcast %cst_52 : f32 to vector<8x64xf32>
    %189 = arith.mulf %188, %187 : vector<8x64xf32>
    %cst_53 = arith.constant 1.000000e+00 : f32
    %190 = vector.broadcast %cst_53 : f32 to vector<8x64xf32>
    %191 = arith.subf %189, %190 : vector<8x64xf32>
    %192 = vector.extract_strided_slice %184 {offsets = [0, 192], sizes = [8, 64], strides = [1, 1]} : vector<8x256xf32> to vector<8x64xf32>
    %193 = arith.mulf %186, %174 : vector<8x64xf32>
    %194 = arith.mulf %185, %191 : vector<8x64xf32>
    %195 = arith.addf %193, %194 : vector<8x64xf32>
    %196 = math.tanh %195 : vector<8x64xf32>
    %197 = arith.mulf %192, %196 : vector<8x64xf32>
    %c72 = arith.constant 72 : index
    %c0_54 = arith.constant 0 : index
    %198 = vector.load %arg7[%c72, %c0_54] : memref<88x256xf32, #tpu.memory_space<vmem>>, vector<8x256xf32>
    %cst_55 = arith.constant dense<0.000000e+00> : vector<8x256xf32>
    %199 = tpu.matmul %197, %7, %cst_55 {dimension_numbers = #tpu.dot_dimension_numbers<[1], [0], [0], [1], [0, 0, 1, 1], [], []>} : vector<8x64xf32>, vector<64x256xf32>, vector<8x256xf32> -> vector<8x256xf32>
    %200 = arith.addf %198, %199 : vector<8x256xf32>
    %201 = arith.negf %200 : vector<8x256xf32>
    %202 = math.exp %201 : vector<8x256xf32>
    %cst_56 = arith.constant 1.000000e+00 : f32
    %203 = vector.broadcast %cst_56 : f32 to vector<8x256xf32>
    %204 = arith.addf %203, %202 : vector<8x256xf32>
    %205 = arith.divf %203, %204 : vector<8x256xf32>
    %206 = vector.extract_strided_slice %205 {offsets = [0, 0], sizes = [8, 64], strides = [1, 1]} : vector<8x256xf32> to vector<8x64xf32>
    %207 = vector.extract_strided_slice %205 {offsets = [0, 64], sizes = [8, 64], strides = [1, 1]} : vector<8x256xf32> to vector<8x64xf32>
    %208 = vector.extract_strided_slice %205 {offsets = [0, 128], sizes = [8, 64], strides = [1, 1]} : vector<8x256xf32> to vector<8x64xf32>
    %cst_57 = arith.constant 2.000000e+00 : f32
    %209 = vector.broadcast %cst_57 : f32 to vector<8x64xf32>
    %210 = arith.mulf %209, %208 : vector<8x64xf32>
    %cst_58 = arith.constant 1.000000e+00 : f32
    %211 = vector.broadcast %cst_58 : f32 to vector<8x64xf32>
    %212 = arith.subf %210, %211 : vector<8x64xf32>
    %213 = vector.extract_strided_slice %205 {offsets = [0, 192], sizes = [8, 64], strides = [1, 1]} : vector<8x256xf32> to vector<8x64xf32>
    %214 = arith.mulf %207, %195 : vector<8x64xf32>
    %215 = arith.mulf %206, %212 : vector<8x64xf32>
    %216 = arith.addf %214, %215 : vector<8x64xf32>
    %217 = math.tanh %216 : vector<8x64xf32>
    %218 = arith.mulf %213, %217 : vector<8x64xf32>
    %c80 = arith.constant 80 : index
    %c0_59 = arith.constant 0 : index
    %219 = vector.load %arg7[%c80, %c0_59] : memref<88x256xf32, #tpu.memory_space<vmem>>, vector<8x256xf32>
    %cst_60 = arith.constant dense<0.000000e+00> : vector<8x256xf32>
    %220 = tpu.matmul %218, %7, %cst_60 {dimension_numbers = #tpu.dot_dimension_numbers<[1], [0], [0], [1], [0, 0, 1, 1], [], []>} : vector<8x64xf32>, vector<64x256xf32>, vector<8x256xf32> -> vector<8x256xf32>
    %221 = arith.addf %219, %220 : vector<8x256xf32>
    %222 = arith.negf %221 : vector<8x256xf32>
    %223 = math.exp %222 : vector<8x256xf32>
    %cst_61 = arith.constant 1.000000e+00 : f32
    %224 = vector.broadcast %cst_61 : f32 to vector<8x256xf32>
    %225 = arith.addf %224, %223 : vector<8x256xf32>
    %226 = arith.divf %224, %225 : vector<8x256xf32>
    %227 = vector.extract_strided_slice %226 {offsets = [0, 0], sizes = [8, 64], strides = [1, 1]} : vector<8x256xf32> to vector<8x64xf32>
    %228 = vector.extract_strided_slice %226 {offsets = [0, 64], sizes = [8, 64], strides = [1, 1]} : vector<8x256xf32> to vector<8x64xf32>
    %229 = vector.extract_strided_slice %226 {offsets = [0, 128], sizes = [8, 64], strides = [1, 1]} : vector<8x256xf32> to vector<8x64xf32>
    %cst_62 = arith.constant 2.000000e+00 : f32
    %230 = vector.broadcast %cst_62 : f32 to vector<8x64xf32>
    %231 = arith.mulf %230, %229 : vector<8x64xf32>
    %cst_63 = arith.constant 1.000000e+00 : f32
    %232 = vector.broadcast %cst_63 : f32 to vector<8x64xf32>
    %233 = arith.subf %231, %232 : vector<8x64xf32>
    %234 = vector.extract_strided_slice %226 {offsets = [0, 192], sizes = [8, 64], strides = [1, 1]} : vector<8x256xf32> to vector<8x64xf32>
    %235 = arith.mulf %228, %216 : vector<8x64xf32>
    %236 = arith.mulf %227, %233 : vector<8x64xf32>
    %237 = arith.addf %235, %236 : vector<8x64xf32>
    %238 = math.tanh %237 : vector<8x64xf32>
    %239 = arith.mulf %234, %238 : vector<8x64xf32>
    %c0_64 = arith.constant 0 : index
    %c0_65 = arith.constant 0 : index
    %240 = vector.load %arg4[%c0_64, %c0_65] : memref<64x128xf32, #tpu.memory_space<vmem>>, vector<64x128xf32>
    %cst_66 = arith.constant dense<0.000000e+00> : vector<8x128xf32>
    %241 = tpu.matmul %239, %240, %cst_66 {dimension_numbers = #tpu.dot_dimension_numbers<[1], [0], [0], [1], [0, 0, 1, 1], [], []>} : vector<8x64xf32>, vector<64x128xf32>, vector<8x128xf32> -> vector<8x128xf32>
    %c0_67 = arith.constant 0 : index
    %c0_68 = arith.constant 0 : index
    %242 = vector.load %arg5[%c0_67, %c0_68] : memref<1x128xf32, #tpu.memory_space<vmem>>, vector<1x128xf32>
    %243 = vector.broadcast %242 : vector<1x128xf32> to vector<8x128xf32>
    %244 = arith.addf %241, %243 : vector<8x128xf32>
    %c0_69 = arith.constant 0 : index
    %c0_70 = arith.constant 0 : index
    %245 = vector.load %arg6[%c0_69, %c0_70] : memref<8x128xf32, #tpu.memory_space<vmem>>, vector<8x128xf32>
    tpu.vector_store %arg6[%c0_69, %c0_70], %244 {strides = array<i32>} : memref<8x128xf32, #tpu.memory_space<vmem>>, vector<8x128xf32>,
    return
  }
}

</mosaic_0001>

<bundles_post_ra>
// kernel: tpu_custom_call.1
= control target key start
LH: loop header
LB: loop body
LE: loop exit
PB: predicated region body
PF: predicated region fallthrough
CT: control target
= control target key end

     0   :  { %11 = vsyncpa [#allocation4], 0  ;;  %s2168_s0 = inlined_call_operand.hbm [shape: f32[88,128], index: 0, kind: input, shape index: {}]   ;;  %s2169_s1 = inlined_call_operand.hbm [shape: f32[128,256], index: 1, kind: input, shape index: {}]   ;;  %s2170_s2 = inlined_call_operand.hbm [shape: f32[64,256], index: 2, kind: input, shape index: {}]   ;;  %s2171_s3 = inlined_call_operand.vmem [shape: f32[1,256], index: 3, kind: input, shape index: {}]   ;;  %s2172_s4 = inlined_call_operand.hbm [shape: f32[64,128], index: 4, kind: input, shape index: {}]   ;;  %s2173_s5 = inlined_call_operand.vmem [shape: f32[1,128], index: 5, kind: input, shape index: {}]   ;;  %s2174_s6 = inlined_call_operand.hbm [shape: f32[8,128], index: 6, kind: output, shape index: {}]  }
   0x1   :  { %12 = vsyncpa [#allocation7], 0 }
   0x2   :  { %13 = vsyncpa [#allocation10], 0 }
   0x3   :  { %14 = vsyncpa [#allocation5], 0  ;;  %s1779_s21 = smov [#allocation6]  }
   0x4   :  { %s32_s22 = sshll.u32 %s1779_s21, 4  ;;  %s33_s22 = int_to_ptr.vmem [resolvable:$true] %s32_s22 }
   0x5   :  { %s1679_s23 = scalar_lea.vmem %s33_s22, 4096  ;;  %p1684_p1 = scmp.lt.s32.totalorder %s33_s22, %s33_s22 }
   0x6   :  { %p1680_p0 = scmp.ne.s32.totalorder %s33_s22, %s1679_s23  ;;  %p1685_p2 = scmp.lt.s32.totalorder %s1679_s23, %s1679_s23 }
   0x8   :  { %p1686_p3 = por %p1685_p2, %p1684_p1 }
   0xa   :  { %p1687_p4 = pnand %p1686_p3, %p1680_p0 }
   0xc   :  { %1690 = shalt.err (!%p1687_p4)
}
   0xd   :  { %s1780_s24 = smov 256   ;;  %s1781_s25 = smov 16  }
   0xe   :  { %38 = dma.hbm_to_vmem [thread:$0]  %s2169_s1, 4096, %s33_s22, [#allocation7], %s1780_s24, %s1780_s24, %s1781_s25  }
   0xf   :  { %s1782_s28 = smov [#allocation3]  }
  0x10   :  { %s20_s29 = sshll.u32 %s1782_s28, 4  ;;  %s21_s29 = int_to_ptr.vmem [resolvable:$true] %s20_s29 }
  0x11   :  { %s1699_s30 = scalar_lea.vmem %s21_s29, 1408  ;;  %p1704_p6 = scmp.lt.s32.totalorder %s21_s29, %s21_s29 }
  0x12   :  { %p1700_p5 = scmp.ne.s32.totalorder %s21_s29, %s1699_s30  ;;  %p1705_p7 = scmp.lt.s32.totalorder %s1699_s30, %s1699_s30 }
  0x14   :  { %p1706_p8 = por %p1705_p7, %p1704_p6 }
  0x16   :  { %p1707_p9 = pnand %p1706_p8, %p1700_p5 }
  0x18   :  { %1710 = shalt.err (!%p1707_p9)
}
  0x19   :  { %s1783_s7 = smov 128   ;;  %s1784_s8 = smov 8  }
  0x1a   :  { %26 = dma.hbm_to_vmem [thread:$0]  %s2168_s0, 1408, %s21_s29, [#allocation4], %s1783_s7, %s1783_s7, %s1784_s8  }
  0x1b   :  { %s1785_s11 = smov [#allocation8]   ;;  %s1786_s13 = smov [#allocation9]  }
  0x1c   :  { %s44_s12 = sshll.u32 %s1785_s11, 4  ;;  %s58_s1 = sshll.u32 %s1786_s13, 4  ;;  %s45_s12 = int_to_ptr.vmem [resolvable:$true] %s44_s12  ;;  %s59_s1 = int_to_ptr.vmem [resolvable:$true] %s58_s1 }
  0x1d   :  { %s1719_s14 = scalar_lea.vmem %s45_s12, 2048  ;;  %p1724_p11 = scmp.lt.s32.totalorder %s45_s12, %s45_s12 }
  0x1e   :  { %p1720_p10 = scmp.ne.s32.totalorder %s45_s12, %s1719_s14  ;;  %p1725_p12 = scmp.lt.s32.totalorder %s1719_s14, %s1719_s14 }
  0x20   :  { %p1726_p13 = por %p1725_p12, %p1724_p11 }
  0x22   :  { %p1727_p0 = pnand %p1726_p13, %p1720_p10 }
  0x24   :  { %1730 = shalt.err (!%p1727_p0)
}
  0x25   :  { %50 = dma.hbm_to_vmem [thread:$0]  %s2170_s2, 2048, %s45_s12, [#allocation7], %s1780_s24, %s1780_s24, %s1781_s25  }
  0x26   :  { %s1739_s0 = scalar_lea.vmem %s59_s1, 1024  ;;  %p1744_p2 = scmp.lt.s32.totalorder %s59_s1, %s59_s1 }
  0x27   :  { %p1740_p1 = scmp.ne.s32.totalorder %s59_s1, %s1739_s0  ;;  %p1745_p3 = scmp.lt.s32.totalorder %s1739_s0, %s1739_s0 }
  0x29   :  { %p1746_p4 = por %p1745_p3, %p1744_p2 }
  0x2b   :  { %p1747_p5 = pnand %p1746_p4, %p1740_p1 }
  0x2d   :  { %1750 = shalt.err (!%p1747_p5)
}
  0x2e   :  { %64 = dma.hbm_to_vmem [thread:$0]  %s2172_s4, 1024, %s59_s1, [#allocation10], %s1783_s7, %s1783_s7, %s1784_s8  }
  0x2f   :  { %1771 = dma.done.wait [#allocation4], 1408  }
  0x30   :  { %1772 = vsyncadd [#allocation4], 4294965888 }
  0x31   :  { %1773 = dma.done.wait [#allocation7], 6144  }
  0x32   :  { %1774 = vsyncadd [#allocation7], 4294961152 }
  0x33   :  { %1775 = dma.done.wait [#allocation10], 1024  }
  0x34   :  { %1776 = vsyncadd [#allocation10], 4294966272  ;;  %v1787_v0 = vmov 0.0   ;;  %v121_v1 = vld [vmem:[#allocation6 + $0xf8] sm:$0xff]  ;;  %v120_v2 = vld [vmem:[#allocation6 + $0xf0] sm:$0xff]  ;;  %v124_v34 = vlaneseq  ;;  %vm337_vm1 = vcmask 523264  }
  0x35   :  { %198 = vmatprep.mubr.f32.mxu0 %v1787_v0  ;;  %404 = vmatprep.mubr.f32.mxu1 %v1787_v0  ;;  %v119_v3 = vld [vmem:[#allocation6 + $0xe8] sm:$0xff]  ;;  %v118_v4 = vld [vmem:[#allocation6 + $0xe0] sm:$0xff]  ;;  %v117_v5 = vld [vmem:[#allocation6 + $0xd8] sm:$0xff]  ;;  %vm1789_vm2 = vmmov 0   ;;  %s1790_s21 = smov [#allocation11]  }
  0x36   :  { %134 = vmatprep.subr.mxu0 %v121_v1  ;;  %v116_v6 = vld [vmem:[#allocation6 + $0xd0] sm:$0xff]  ;;  %v115_v7 = vld [vmem:[#allocation6 + $0xc8] sm:$0xff]  ;;  %v114_v8 = vld [vmem:[#allocation6 + $0xc0] sm:$0xff]  ;;  %v125_v35 = vshrl.u32 %v124_v34, 7  ;;  %v304_v51 = vand.u32 127, %v124_v34  ;;  %s1464_s22 = sshll.u32 %s1790_s21, 4  ;;  %s1465_s22 = int_to_ptr.vmem [resolvable:$true] %s1464_s22 }
  0x37   :  { %135 = vmatpush1.msra.mxu0 %v120_v2  ;;  %v113_v9 = vld [vmem:[#allocation6 + $0xb8] sm:$0xff]  ;;  %v112_v10 = vld [vmem:[#allocation6 + $0xb0] sm:$0xff]  ;;  %v111_v11 = vld [vmem:[#allocation6 + $0xa8] sm:$0xff]  ;;  %s1751_s23 = scalar_lea.vmem %s1465_s22, 128  ;;  %p1756_p7 = scmp.lt.s32.totalorder %s1465_s22, %s1465_s22 }
  0x38   :  { %136 = vmatprep.subr.mxu0 %v119_v3  ;;  %v110_v12 = vld [vmem:[#allocation6 + $0xa0] sm:$0xff]  ;;  %v109_v13 = vld [vmem:[#allocation6 + $0x98] sm:$0xff]  ;;  %v108_v14 = vld [vmem:[#allocation6 + $0x90] sm:$0xff]  ;;  %v126_v36 = vsub.s32 0, %v125_v35  ;;  %v130_v38 = vsub.s32 1, %v125_v35  ;;  %vm305_vm0 = vcmp.lt.s32.totalorder %v304_v51, 32  ;;  %p1752_p6 = scmp.ne.s32.totalorder %s1465_s22, %s1751_s23  ;;  %p1757_p8 = scmp.lt.s32.totalorder %s1751_s23, %s1751_s23 }
  0x39   :  { %137 = vmatpush1.msra.mxu0 %v118_v4  ;;  %v107_v15 = vld [vmem:[#allocation6 + $0x88] sm:$0xff]  ;;  %v106_v16 = vld [vmem:[#allocation6 + $0x80] sm:$0xff]  ;;  %v105_v17 = vld [vmem:[#allocation6 + $0x78] sm:$0xff]  ;;  %v1475_v56 = vsel %vm305_vm0, 1.0, %v1787_v0 }
  0x3a   :  { %138 = vmatprep.subr.mxu0 %v117_v5  ;;  %v104_v18 = vld [vmem:[#allocation6 + $0x70] sm:$0xff]  ;;  %v103_v19 = vld [vmem:[#allocation6 + $0x68] sm:$0xff]  ;;  %v102_v20 = vld [vmem:[#allocation6 + $0x60] sm:$0xff]  ;;  %p1758_p9 = por %p1757_p8, %p1756_p7 }
  0x3b   :  { %139 = vmatpush1.msra.mxu0 %v116_v6  ;;  %v101_v21 = vld [vmem:[#allocation6 + $0x58] sm:$0xff]  ;;  %v100_v22 = vld [vmem:[#allocation6 + $0x50] sm:$0xff]  ;;  %v99_v23 = vld [vmem:[#allocation6 + $0x48] sm:$0xff] }
  0x3c   :  { %140 = vmatprep.subr.mxu0 %v115_v7  ;;  %v98_v24 = vld [vmem:[#allocation6 + $0x40] sm:$0xff]  ;;  %v97_v25 = vld [vmem:[#allocation6 + $0x38] sm:$0xff]  ;;  %v96_v26 = vld [vmem:[#allocation6 + $0x30] sm:$0xff]  ;;  %p1759_p10 = pnand %p1758_p9, %p1752_p6 }
  0x3d   :  { %141 = vmatpush1.msra.mxu0 %v114_v8  ;;  %v95_v27 = vld [vmem:[#allocation6 + $0x28] sm:$0xff]  ;;  %v94_v28 = vld [vmem:[#allocation6 + $0x20] sm:$0xff]  ;;  %v93_v29 = vld [vmem:[#allocation6 + $0x18] sm:$0xff] }
  0x3e   :  { %142 = vmatprep.subr.mxu0 %v113_v9  ;;  %v92_v30 = vld [vmem:[#allocation6 + $0x10] sm:$0xff]  ;;  %v91_v31 = vld [vmem:[#allocation6 + $0x8] sm:$0xff]  ;;  %v90_v32 = vld [vmem:[#allocation6] sm:$0xff] }
  0x3f   :  { %143 = vmatpush1.msra.mxu0 %v112_v10  ;;  %v79_v33 = vld [vmem:[#allocation3] sm:$0xff]  ;;  %v1861_v59 = vld [vmem:[#allocation8 + $0x78] sm:$0xff]  ;;  %v1863_v60 = vld [vmem:[#allocation8 + $0x70] sm:$0xff] }
  0x40   :  { %144 = vmatprep.subr.mxu0 %v111_v11  ;;  %v122_v37 = vld [vmem:[%s2171_s3] sm:$0x3]  ;;  %s1788_s3 = smov 64   ;;  %356 = vmatprep.subr.mxu1 %v1861_v59  ;;  %v1868_v62 = vld [vmem:[#allocation8 + $0x60] sm:$0xff]  ;;  %v1872_v63 = vld [vmem:[#allocation8 + $0x58] sm:$0xff] }
  0x41   :  { %145 = vmatpush1.msra.mxu0 %v110_v12  ;;  %v1850_v39 = vrot.slane %v122_v37, %v126_v36  ;;  %v1852_v40 = vrot.slane %v122_v37, %v130_v38  ;;  %v1865_v61 = vld [vmem:[#allocation8 + $0x68] sm:$0xff]  ;;  %357 = vmatpush1.msra.mxu1 %v1863_v60  ;;  %v1876_v1 = vld [vmem:[#allocation8 + $0x50] sm:$0xff]  ;;  %v1884_v4 = vld [vmem:[#allocation8 + $0x40] sm:$0xff] }
  0x42   :  { %146 = vmatprep.subr.mxu0 %v109_v13  ;;  %358 = vmatprep.subr.mxu1 %v1865_v61  ;;  %v1880_v2 = vld [vmem:[#allocation8 + $0x48] sm:$0xff]  ;;  %v80_v3 = vld [vmem:[#allocation3 + $0x8] sm:$0xff]  ;;  %v1887_v5 = vld [vmem:[#allocation8 + $0x38] sm:$0xff] }
  0x43   :  { %147 = vmatpush1.msra.mxu0 %v108_v14  ;;  %359 = vmatpush1.msra.mxu1 %v1868_v62  ;;  %v1891_v6 = vld [vmem:[#allocation8 + $0x30] sm:$0xff]  ;;  %v1895_v7 = vld [vmem:[#allocation8 + $0x28] sm:$0xff]  ;;  %v1899_v8 = vld [vmem:[#allocation8 + $0x20] sm:$0xff] }
  0x44   :  { %148 = vmatprep.subr.mxu0 %v107_v15  ;;  %360 = vmatprep.subr.mxu1 %v1872_v63  ;;  %v1903_v10 = vld [vmem:[#allocation8 + $0x18] sm:$0xff]  ;;  %v1908_v11 = vld [vmem:[#allocation8 + $0x10] sm:$0xff]  ;;  %v1911_v12 = vld [vmem:[#allocation8 + $0x8] sm:$0xff] }
  0x45   :  { %149 = vmatpush1.msra.mxu0 %v106_v16  ;;  %361 = vmatpush1.msra.mxu1 %v1876_v1  ;;  %v1915_v13 = vld [vmem:[#allocation8] sm:$0xff]  ;;  %v81_v36 = vld [vmem:[#allocation3 + $0x10] sm:$0xff] }
  0x46   :  { %150 = vmatprep.subr.mxu0 %v105_v17  ;;  %362 = vmatprep.subr.mxu1 %v1880_v2 }
  0x47   :  { %151 = vmatpush1.msra.mxu0 %v104_v18  ;;  %363 = vmatpush1.msra.mxu1 %v1884_v4 }
  0x48   :  { %152 = vmatprep.subr.mxu0 %v103_v19  ;;  %364 = vmatprep.subr.mxu1 %v1887_v5 }
  0x49   :  { %153 = vmatpush1.msra.mxu0 %v102_v20  ;;  %365 = vmatpush1.msra.mxu1 %v1891_v6 }
  0x4a   :  { %154 = vmatprep.subr.mxu0 %v101_v21  ;;  %366 = vmatprep.subr.mxu1 %v1895_v7 }
  0x4b   :  { %155 = vmatpush1.msra.mxu0 %v100_v22  ;;  %367 = vmatpush1.msra.mxu1 %v1899_v8 }
  0x4c   :  { %156 = vmatprep.subr.mxu0 %v99_v23  ;;  %368 = vmatprep.subr.mxu1 %v1903_v10 }
  0x4d   :  { %157 = vmatpush1.msra.mxu0 %v98_v24  ;;  %369 = vmatpush1.msra.mxu1 %v1908_v11 }
  0x4e   :  { %158 = vmatprep.subr.mxu0 %v97_v25  ;;  %370 = vmatprep.subr.mxu1 %v1911_v12 }
  0x4f   :  { %159 = vmatpush1.msra.mxu0 %v96_v26  ;;  %371 = vmatpush1.msra.mxu1 %v1915_v13 }
  0x50   :  { %160 = vmatprep.subr.mxu0 %v95_v27  ;;  %463 = vmatprep.subr.mxu1 %v1861_v59 }
  0x51   :  { %161 = vmatpush1.msra.mxu0 %v94_v28 }
  0x52   :  { %162 = vmatprep.subr.mxu0 %v93_v29 }
  0x53   :  { %163 = vmatpush1.msra.mxu0 %v92_v30 }
  0x54   :  { %164 = vmatprep.subr.mxu0 %v91_v31 }
  0x55   :  { %165 = vmatpush1.msra.mxu0 %v90_v32 }
  0x56   :  { %199 = vmatmul.mubr.f32.vlgmr.msra.gmra.mxu0 %v79_v33  ;;  %772 = vmatprep.subr.mxu0 %v1861_v59 }
  0x57   :  { %204 = vmatprep.mubr.f32.mxu0 %v1787_v0  ;;  %773 = vmatpush1.msra.mxu0 %v1863_v60 }
  0x58   :  { %774 = vmatprep.subr.mxu0 %v1865_v61 }
  0x59   :  { %775 = vmatpush1.msra.mxu0 %v1868_v62 }
  0x5a   :  { %205 = vmatmul.mubr.f32.gmra.mxu0 %v80_v3  ;;  %776 = vmatprep.subr.mxu0 %v1872_v63 }
  0x5b   :  { %210 = vmatprep.mubr.f32.mxu0 %v1787_v0  ;;  %777 = vmatpush1.msra.mxu0 %v1876_v1 }
  0x5c   :  { %778 = vmatprep.subr.mxu0 %v1880_v2 }
  0x5d   :  { %779 = vmatpush1.msra.mxu0 %v1884_v4 }
  0x5e   :  { %780 = vmatprep.subr.mxu0 %v1887_v5  ;;  %211 = vmatmul.mubr.f32.gmra.mxu0 %v81_v36 }
  0x5f   :  { %781 = vmatpush1.msra.mxu0 %v1891_v6  ;;  %216 = vmatprep.mubr.f32.mxu0 %v1787_v0 }
  0x60   :  { %782 = vmatprep.subr.mxu0 %v1895_v7 }
  0x61   :  { %783 = vmatpush1.msra.mxu0 %v1899_v8 }
  0x62   :  { %784 = vmatprep.subr.mxu0 %v1903_v10 }
  0x63   :  { %785 = vmatpush1.msra.mxu0 %v1908_v11 }
  0x64   :  { %786 = vmatprep.subr.mxu0 %v1911_v12 }
  0x65   :  { %787 = vmatpush1.msra.mxu0 %v1915_v13 }
  0x66   :  { %978 = vmatprep.subr.mxu0 %v1861_v59 }
 0x116   :  { %v200_v41 = vpop.f32.mrf.mxu0 }
 0x117   :  { %v201_v42 = vadd.f32 %v200_v41, %v1850_v39 }
 0x118   :  { %v202_v43 = vpop.f32.mrf.mxu0 }
 0x119   :  { %v1476_v44 = vmul.f32 -1.442695, %v201_v42  ;;  %v203_v45 = vadd.f32 %v202_v43, %v1852_v40 }
 0x11a   :  { %v206_v17 = vpop.f32.mrf.mxu0 }
 0x11b   :  { %v1477_v46 = vmul.f32 -1.442695, %v203_v45  ;;  %1561 = vpow2.f32 %v1476_v44  ;;  %v207_v18 = vadd.f32 %v206_v17, %v1850_v39 }
 0x11c   :  { %v208_v19 = vpop.f32.mrf.mxu0 }
 0x11d   :  { %1563 = vpow2.f32 %v1477_v46  ;;  %v209_v21 = vadd.f32 %v208_v19, %v1852_v40 }
 0x11e   :  { %v212_v46 = vpop.f32.mrf.mxu0 }
 0x128   :  { %v1562_v47 = vpop.eup %1561 }
 0x129   :  { %v316_v50 = vadd.f32 1.0, %v1562_v47  ;;  %v213_v47 = vadd.f32 %v212_v46, %v1850_v39  ;;  %v83_v46 = vld [vmem:[#allocation3 + $0x20] sm:$0xff] }
 0x12a   :  { %v1564_v48 = vpop.eup %1563 }
 0x12b   :  { %v317_v49 = vadd.f32 1.0, %v1564_v48  ;;  %v214_v48 = vpop.f32.mrf.mxu0 }
 0x12d   :  { %1565 = vrcp.f32 %v317_v49 }
 0x12e   :  { %1567 = vrcp.f32 %v316_v50  ;;  %v215_v50 = vadd.f32 %v214_v48, %v1852_v40 }
 0x13a   :  { %v1856_v52 = vpop.eup %1565 }
 0x13b   :  { %v322_v53 = vmul.f32 2.0, %v1856_v52  ;;  %v1568_v55 = vpop.eup %1567 }
 0x13d   :  { %v1478_v54 = vadd.f32 -1.0, %v322_v53 }
 0x13f   :  { %v324_v57 = vmul.f32 %v1568_v55, %v1478_v54 }
 0x141   :  { %v325_v58 = vmul.f32 %v1475_v56, %v324_v57 }
 0x143   :  { %428 = vrot.lane.b32.xlu1 %v325_v58, %s1788_s3  ;;  %1569 = vtanh.f32 %v325_v58 }
 0x150   :  { %v1570_v9 = vpop.eup %1569 }
 0x151   :  { %328 = vrot.lane.b32.xlu0 %v1570_v9, %s1788_s3 }
 0x1b5   :  { %v429_v37 = vpop.permute.xlu1 %428 }
 0x1c3   :  { %v329_v14 = vpop.permute.xlu0 %328 }
 0x1c4   :  { %v331_v15 = vmul.f32 %v1856_v52, %v329_v14 }
 0x1c6   :  { %335 = vrot.lane.b32.xlu0 %v331_v15, %s1788_s3 }
 0x238   :  { %v336_v16 = vpop.permute.xlu0 %335 }
 0x239   :  { %1479 = vmatmul.mubr.msk.f32.vlgmr.msra.gmra.mxu1 %vm337_vm1, %v336_v16 }
 0x23a   :  { %464 = vmatpush1.msra.mxu1 %v1863_v60  ;;  %511 = vmatprep.mubr.f32.mxu1 %v1787_v0 }
 0x23b   :  { %465 = vmatprep.subr.mxu1 %v1865_v61 }
 0x23c   :  { %466 = vmatpush1.msra.mxu1 %v1868_v62 }
 0x23d   :  { %467 = vmatprep.subr.mxu1 %v1872_v63 }
 0x23e   :  { %468 = vmatpush1.msra.mxu1 %v1876_v1 }
 0x23f   :  { %469 = vmatprep.subr.mxu1 %v1880_v2 }
 0x240   :  { %470 = vmatpush1.msra.mxu1 %v1884_v4 }
 0x241   :  { %471 = vmatprep.subr.mxu1 %v1887_v5 }
 0x242   :  { %472 = vmatpush1.msra.mxu1 %v1891_v6 }
 0x243   :  { %473 = vmatprep.subr.mxu1 %v1895_v7 }
 0x244   :  { %474 = vmatpush1.msra.mxu1 %v1899_v8 }
 0x245   :  { %475 = vmatprep.subr.mxu1 %v1903_v10 }
 0x246   :  { %476 = vmatpush1.msra.mxu1 %v1908_v11 }
 0x247   :  { %477 = vmatprep.subr.mxu1 %v1911_v12 }
 0x248   :  { %478 = vmatpush1.msra.mxu1 %v1915_v13 }
 0x249   :  { %566 = vmatprep.subr.mxu1 %v1861_v59 }
 0x2f9   :  { %v406_v20 = vpop.f32.mrf.mxu1 }
 0x2fa   :  { %v411_v22 = vadd.f32 %v406_v20, %v207_v18  ;;  %v82_v18 = vld [vmem:[#allocation3 + $0x18] sm:$0xff] }
 0x2fb   :  { %v408_v23 = vpop.f32.mrf.mxu1  ;;  %217 = vmatmul.mubr.f32.gmra.mxu0 %v82_v18 }
 0x2fc   :  { %v1480_v24 = vmul.f32 -1.442695, %v411_v22  ;;  %v412_v25 = vadd.f32 %v408_v23, %v209_v21  ;;  %222 = vmatprep.mubr.f32.mxu0 %v1787_v0 }
 0x2fe   :  { %v1481_v26 = vmul.f32 -1.442695, %v412_v25  ;;  %1571 = vpow2.f32 %v1480_v24 }
 0x2ff   :  { %223 = vmatmul.mubr.f32.gmra.mxu0 %v83_v46 }
 0x300   :  { %1573 = vpow2.f32 %v1481_v26  ;;  %228 = vmatprep.mubr.f32.mxu0 %v1787_v0 }
 0x30b   :  { %v1572_v27 = vpop.eup %1571 }
 0x30c   :  { %v419_v30 = vadd.f32 1.0, %v1572_v27 }
 0x30d   :  { %v1574_v28 = vpop.eup %1573 }
 0x30e   :  { %v420_v29 = vadd.f32 1.0, %v1574_v28 }
 0x310   :  { %1575 = vrcp.f32 %v420_v29 }
 0x311   :  { %1577 = vrcp.f32 %v419_v30 }
 0x31d   :  { %v1576_v31 = vpop.eup %1575 }
 0x31e   :  { %v425_v32 = vmul.f32 2.0, %v1576_v31  ;;  %v1578_v34 = vpop.eup %1577 }
 0x31f   :  { %v431_v38 = vmul.f32 %v1578_v34, %v429_v37 }
 0x320   :  { %v1482_v33 = vadd.f32 -1.0, %v425_v32 }
 0x322   :  { %v432_v35 = vmul.f32 %v1578_v34, %v1482_v33 }
 0x324   :  { %434 = vrot.lane.b32.xlu1 %v432_v35, %s1788_s3 }
 0x396   :  { %v435_v41 = vpop.permute.xlu1 %434 }
 0x397   :  { %v437_v42 = vadd.f32 %v435_v41, %v431_v38 }
 0x399   :  { %1579 = vtanh.f32 %v437_v42 }
 0x3a6   :  { %v1580_v43 = vpop.eup %1579 }
 0x3a7   :  { %v439_v44 = vmul.f32 %v1580_v43, %v1576_v31 }
 0x3a9   :  { %443 = vrot.lane.b32.xlu0 %v439_v44, %s1788_s3 }
 0x3bb   :  { %v218_v25 = vpop.f32.mrf.mxu0 }
 0x3bc   :  { %v219_v26 = vadd.f32 %v218_v25, %v1850_v39  ;;  %v84_v25 = vld [vmem:[#allocation3 + $0x28] sm:$0xff] }
 0x3bd   :  { %v220_v27 = vpop.f32.mrf.mxu0  ;;  %229 = vmatmul.mubr.f32.gmra.mxu0 %v84_v25 }
 0x3be   :  { %v221_v29 = vadd.f32 %v220_v27, %v1852_v40  ;;  %234 = vmatprep.mubr.f32.mxu0 %v1787_v0  ;;  %v86_v27 = vld [vmem:[#allocation3 + $0x38] sm:$0xff] }
 0x41b   :  { %v444_v45 = vpop.permute.xlu0 %443 }
 0x41c   :  { %1483 = vmatmul.mubr.msk.f32.vlgmr.msra.gmra.mxu1 %vm337_vm1, %v444_v45 }
 0x41d   :  { %567 = vmatpush1.msra.mxu1 %v1863_v60  ;;  %614 = vmatprep.mubr.f32.mxu1 %v1787_v0 }
 0x41e   :  { %568 = vmatprep.subr.mxu1 %v1865_v61 }
 0x41f   :  { %569 = vmatpush1.msra.mxu1 %v1868_v62 }
 0x420   :  { %570 = vmatprep.subr.mxu1 %v1872_v63 }
 0x421   :  { %571 = vmatpush1.msra.mxu1 %v1876_v1 }
 0x422   :  { %572 = vmatprep.subr.mxu1 %v1880_v2 }
 0x423   :  { %573 = vmatpush1.msra.mxu1 %v1884_v4 }
 0x424   :  { %574 = vmatprep.subr.mxu1 %v1887_v5 }
 0x425   :  { %575 = vmatpush1.msra.mxu1 %v1891_v6 }
 0x426   :  { %576 = vmatprep.subr.mxu1 %v1895_v7 }
 0x427   :  { %577 = vmatpush1.msra.mxu1 %v1899_v8 }
 0x428   :  { %578 = vmatprep.subr.mxu1 %v1903_v10 }
 0x429   :  { %579 = vmatpush1.msra.mxu1 %v1908_v11 }
 0x42a   :  { %580 = vmatprep.subr.mxu1 %v1911_v12 }
 0x42b   :  { %581 = vmatpush1.msra.mxu1 %v1915_v13 }
 0x42c   :  { %669 = vmatprep.subr.mxu1 %v1861_v59 }
 0x4dc   :  { %v513_v49 = vpop.f32.mrf.mxu1 }
 0x4dd   :  { %v518_v51 = vadd.f32 %v513_v49, %v213_v47 }
 0x4de   :  { %v515_v52 = vpop.f32.mrf.mxu1 }
 0x4df   :  { %v1484_v53 = vmul.f32 -1.442695, %v518_v51  ;;  %v519_v54 = vadd.f32 %v515_v52, %v215_v50 }
 0x4e1   :  { %v1485_v55 = vmul.f32 -1.442695, %v519_v54  ;;  %1581 = vpow2.f32 %v1484_v53  ;;  %v224_v53 = vpop.f32.mrf.mxu0 }
 0x4e2   :  { %v225_v54 = vadd.f32 %v224_v53, %v1850_v39 }
 0x4e3   :  { %1583 = vpow2.f32 %v1485_v55  ;;  %v226_v55 = vpop.f32.mrf.mxu0 }
 0x4ee   :  { %v1582_v56 = vpop.eup %1581 }
 0x4ef   :  { %v526_v3 = vadd.f32 1.0, %v1582_v56 }
 0x4f0   :  { %v1584_v57 = vpop.eup %1583 }
 0x4f1   :  { %v527_v58 = vadd.f32 1.0, %v1584_v57  ;;  %v227_v57 = vadd.f32 %v226_v55, %v1852_v40 }
 0x4f3   :  { %1585 = vrcp.f32 %v527_v58 }
 0x4f4   :  { %1587 = vrcp.f32 %v526_v3 }
 0x500   :  { %v1586_v9 = vpop.eup %1585 }
 0x501   :  { %v532_v14 = vmul.f32 2.0, %v1586_v9  ;;  %v1588_v16 = vpop.eup %1587 }
 0x502   :  { %v534_v19 = vmul.f32 %v1588_v16, %v437_v42 }
 0x503   :  { %v1486_v15 = vadd.f32 -1.0, %v532_v14 }
 0x505   :  { %v535_v17 = vmul.f32 %v1588_v16, %v1486_v15 }
 0x507   :  { %537 = vrot.lane.b32.xlu1 %v535_v17, %s1788_s3 }
 0x579   :  { %v538_v20 = vpop.permute.xlu1 %537 }
 0x57a   :  { %v540_v21 = vadd.f32 %v538_v20, %v534_v19 }
 0x57c   :  { %1589 = vtanh.f32 %v540_v21 }
 0x589   :  { %v1590_v22 = vpop.eup %1589 }
 0x58a   :  { %v542_v23 = vmul.f32 %v1590_v22, %v1586_v9 }
 0x58c   :  { %546 = vrot.lane.b32.xlu0 %v542_v23, %s1788_s3 }
 0x5fe   :  { %v547_v24 = vpop.permute.xlu0 %546 }
 0x5ff   :  { %1487 = vmatmul.mubr.msk.f32.vlgmr.msra.gmra.mxu1 %vm337_vm1, %v547_v24 }
 0x600   :  { %670 = vmatpush1.msra.mxu1 %v1863_v60  ;;  %717 = vmatprep.mubr.f32.mxu1 %v1787_v0 }
 0x601   :  { %671 = vmatprep.subr.mxu1 %v1865_v61 }
 0x602   :  { %672 = vmatpush1.msra.mxu1 %v1868_v62 }
 0x603   :  { %673 = vmatprep.subr.mxu1 %v1872_v63 }
 0x604   :  { %674 = vmatpush1.msra.mxu1 %v1876_v1 }
 0x605   :  { %675 = vmatprep.subr.mxu1 %v1880_v2 }
 0x606   :  { %676 = vmatpush1.msra.mxu1 %v1884_v4 }
 0x607   :  { %677 = vmatprep.subr.mxu1 %v1887_v5 }
 0x608   :  { %678 = vmatpush1.msra.mxu1 %v1891_v6 }
 0x609   :  { %679 = vmatprep.subr.mxu1 %v1895_v7 }
 0x60a   :  { %680 = vmatpush1.msra.mxu1 %v1899_v8 }
 0x60b   :  { %681 = vmatprep.subr.mxu1 %v1903_v10 }
 0x60c   :  { %682 = vmatpush1.msra.mxu1 %v1908_v11 }
 0x60d   :  { %683 = vmatprep.subr.mxu1 %v1911_v12 }
 0x60e   :  { %684 = vmatpush1.msra.mxu1 %v1915_v13 }
 0x60f   :  { %875 = vmatprep.subr.mxu1 %v1861_v59 }
 0x6bf   :  { %v616_v28 = vpop.f32.mrf.mxu1 }
 0x6c0   :  { %v621_v30 = vadd.f32 %v616_v28, %v219_v26  ;;  %v85_v26 = vld [vmem:[#allocation3 + $0x30] sm:$0xff]  ;;  %v87_v28 = vld [vmem:[#allocation3 + $0x40] sm:$0xff] }
 0x6c1   :  { %v618_v31 = vpop.f32.mrf.mxu1  ;;  %235 = vmatmul.mubr.f32.gmra.mxu0 %v85_v26 }
 0x6c2   :  { %v1488_v32 = vmul.f32 -1.442695, %v621_v30  ;;  %v622_v33 = vadd.f32 %v618_v31, %v221_v29  ;;  %240 = vmatprep.mubr.f32.mxu0 %v1787_v0  ;;  %v88_v29 = vld [vmem:[#allocation3 + $0x48] sm:$0xff]  ;;  %v89_v30 = vld [vmem:[#allocation3 + $0x50] sm:$0xff] }
 0x6c4   :  { %v1489_v34 = vmul.f32 -1.442695, %v622_v33  ;;  %1591 = vpow2.f32 %v1488_v32 }
 0x6c5   :  { %241 = vmatmul.mubr.f32.gmra.mxu0 %v86_v27 }
 0x6c6   :  { %1593 = vpow2.f32 %v1489_v34  ;;  %246 = vmatprep.mubr.f32.mxu0 %v1787_v0 }
 0x6c9   :  { %247 = vmatmul.mubr.f32.gmra.mxu0 %v87_v28 }
 0x6ca   :  { %252 = vmatprep.mubr.f32.mxu0 %v1787_v0 }
 0x6cd   :  { %253 = vmatmul.mubr.f32.gmra.mxu0 %v88_v29 }
 0x6ce   :  { %258 = vmatprep.mubr.f32.mxu0 %v1787_v0 }
 0x6d1   :  { %v1592_v35 = vpop.eup %1591  ;;  %259 = vmatmul.mubr.f32.gmra.mxu0 %v89_v30 }
 0x6d2   :  { %v629_v38 = vadd.f32 1.0, %v1592_v35  ;;  %820 = vmatprep.mubr.f32.mxu0 %v1787_v0 }
 0x6d3   :  { %v1594_v36 = vpop.eup %1593 }
 0x6d4   :  { %v630_v37 = vadd.f32 1.0, %v1594_v36 }
 0x6d6   :  { %1595 = vrcp.f32 %v630_v37  ;;  %v230_v37 = vpop.f32.mrf.mxu0 }
 0x6d7   :  { %1597 = vrcp.f32 %v629_v38 }
 0x6d8   :  { %v232_v38 = vpop.f32.mrf.mxu0 }
 0x6d9   :  { %v233_v53 = vadd.f32 %v232_v38, %v1852_v40 }
 0x6e3   :  { %v1596_v41 = vpop.eup %1595 }
 0x6e4   :  { %v635_v42 = vmul.f32 2.0, %v1596_v41  ;;  %v1598_v44 = vpop.eup %1597 }
 0x6e5   :  { %v637_v47 = vmul.f32 %v1598_v44, %v540_v21 }
 0x6e6   :  { %v1490_v43 = vadd.f32 -1.0, %v635_v42 }
 0x6e8   :  { %v638_v45 = vmul.f32 %v1598_v44, %v1490_v43 }
 0x6ea   :  { %640 = vrot.lane.b32.xlu1 %v638_v45, %s1788_s3 }
 0x75c   :  { %v641_v48 = vpop.permute.xlu1 %640 }
 0x75d   :  { %v1999_v49 = vadd.f32 %v641_v48, %v637_v47 }
 0x75f   :  { %1599 = vtanh.f32 %v1999_v49 }
 0x76c   :  { %v1600_v50 = vpop.eup %1599 }
 0x76d   :  { %v645_v51 = vmul.f32 %v1600_v50, %v1596_v41 }
 0x76f   :  { %649 = vrot.lane.b32.xlu0 %v645_v51, %s1788_s3  ;;  %v231_v51 = vadd.f32 %v230_v37, %v1850_v39 }
 0x781   :  { %v236_v41 = vpop.f32.mrf.mxu0 }
 0x782   :  { %v237_v27 = vadd.f32 %v236_v41, %v1850_v39 }
 0x783   :  { %v238_v42 = vpop.f32.mrf.mxu0 }
 0x784   :  { %v239_v29 = vadd.f32 %v238_v42, %v1852_v40 }
 0x785   :  { %v2050_v43 = vpop.f32.mrf.mxu0 }
 0x787   :  { %v2052_v44 = vpop.f32.mrf.mxu0 }
 0x789   :  { %v2054_v45 = vpop.f32.mrf.mxu0 }
 0x78b   :  { %v2056_v46 = vpop.f32.mrf.mxu0 }
 0x78d   :  { %v2058_v47 = vpop.f32.mrf.mxu0 }
 0x78f   :  { %v2060_v48 = vpop.f32.mrf.mxu0 }
 0x7e1   :  { %v650_v52 = vpop.permute.xlu0 %649 }
 0x7e2   :  { %1491 = vmatmul.mubr.msk.f32.vlgmr.msra.gmra.mxu1 %vm337_vm1, %v650_v52 }
 0x7e3   :  { %876 = vmatpush1.msra.mxu1 %v1863_v60  ;;  %923 = vmatprep.mubr.f32.mxu1 %v1787_v0 }
 0x7e4   :  { %877 = vmatprep.subr.mxu1 %v1865_v61 }
 0x7e5   :  { %878 = vmatpush1.msra.mxu1 %v1868_v62 }
 0x7e6   :  { %879 = vmatprep.subr.mxu1 %v1872_v63 }
 0x7e7   :  { %880 = vmatpush1.msra.mxu1 %v1876_v1 }
 0x7e8   :  { %881 = vmatprep.subr.mxu1 %v1880_v2 }
 0x7e9   :  { %882 = vmatpush1.msra.mxu1 %v1884_v4 }
 0x7ea   :  { %883 = vmatprep.subr.mxu1 %v1887_v5 }
 0x7eb   :  { %884 = vmatpush1.msra.mxu1 %v1891_v6 }
 0x7ec   :  { %885 = vmatprep.subr.mxu1 %v1895_v7 }
 0x7ed   :  { %886 = vmatpush1.msra.mxu1 %v1899_v8 }
 0x7ee   :  { %887 = vmatprep.subr.mxu1 %v1903_v10 }
 0x7ef   :  { %888 = vmatpush1.msra.mxu1 %v1908_v11 }
 0x7f0   :  { %889 = vmatprep.subr.mxu1 %v1911_v12 }
 0x7f1   :  { %890 = vmatpush1.msra.mxu1 %v1915_v13 }
 0x7f2   :  { %1081 = vmatprep.subr.mxu1 %v1861_v59 }
 0x8a2   :  { %v719_v56 = vpop.f32.mrf.mxu1 }
 0x8a3   :  { %v724_v58 = vadd.f32 %v719_v56, %v225_v54 }
 0x8a4   :  { %v721_v3 = vpop.f32.mrf.mxu1 }
 0x8a5   :  { %v1492_v9 = vmul.f32 -1.442695, %v724_v58  ;;  %v725_v14 = vadd.f32 %v721_v3, %v227_v57 }
 0x8a7   :  { %v1493_v15 = vmul.f32 -1.442695, %v725_v14  ;;  %1601 = vpow2.f32 %v1492_v9 }
 0x8a9   :  { %1603 = vpow2.f32 %v1493_v15 }
 0x8b4   :  { %v1602_v16 = vpop.eup %1601 }
 0x8b5   :  { %v732_v19 = vadd.f32 1.0, %v1602_v16 }
 0x8b6   :  { %v1604_v17 = vpop.eup %1603 }
 0x8b7   :  { %v733_v18 = vadd.f32 1.0, %v1604_v17 }
 0x8b9   :  { %1605 = vrcp.f32 %v733_v18 }
 0x8ba   :  { %1607 = vrcp.f32 %v732_v19 }
 0x8c6   :  { %v1606_v20 = vpop.eup %1605 }
 0x8c7   :  { %v738_v21 = vmul.f32 2.0, %v1606_v20  ;;  %v1608_v23 = vpop.eup %1607 }
 0x8c8   :  { %v740_v31 = vmul.f32 %v1608_v23, %v1999_v49  ;;  %v2062_v49 = vpop.f32.mrf.mxu0 }
 0x8c9   :  { %v1494_v22 = vadd.f32 -1.0, %v738_v21 }
 0x8ca   :  { %v2064_v50 = vpop.f32.mrf.mxu0 }
 0x8cb   :  { %v741_v24 = vmul.f32 %v1608_v23, %v1494_v22 }
 0x8cd   :  { %743 = vrot.lane.b32.xlu1 %v741_v24, %s1788_s3 }
 0x93f   :  { %v744_v32 = vpop.permute.xlu1 %743 }
 0x940   :  { %v746_v33 = vadd.f32 %v744_v32, %v740_v31 }
 0x942   :  { %1609 = vtanh.f32 %v746_v33 }
 0x94f   :  { %v1610_v34 = vpop.eup %1609 }
 0x950   :  { %v748_v35 = vmul.f32 %v1610_v34, %v1606_v20 }
 0x952   :  { %752 = vrot.lane.b32.xlu0 %v748_v35, %s1788_s3 }
 0x9c4   :  { %v753_v36 = vpop.permute.xlu0 %752 }
 0x9c5   :  { %1495 = vmatmul.mubr.msk.f32.vlgmr.msra.gmra.mxu0 %vm337_vm1, %v753_v36 }
 0x9c6   :  { %979 = vmatpush1.msra.mxu0 %v1863_v60  ;;  %1026 = vmatprep.mubr.f32.mxu0 %v1787_v0 }
 0x9c7   :  { %980 = vmatprep.subr.mxu0 %v1865_v61 }
 0x9c8   :  { %981 = vmatpush1.msra.mxu0 %v1868_v62 }
 0x9c9   :  { %982 = vmatprep.subr.mxu0 %v1872_v63 }
 0x9ca   :  { %983 = vmatpush1.msra.mxu0 %v1876_v1 }
 0x9cb   :  { %984 = vmatprep.subr.mxu0 %v1880_v2 }
 0x9cc   :  { %985 = vmatpush1.msra.mxu0 %v1884_v4 }
 0x9cd   :  { %986 = vmatprep.subr.mxu0 %v1887_v5 }
 0x9ce   :  { %987 = vmatpush1.msra.mxu0 %v1891_v6 }
 0x9cf   :  { %988 = vmatprep.subr.mxu0 %v1895_v7 }
 0x9d0   :  { %989 = vmatpush1.msra.mxu0 %v1899_v8 }
 0x9d1   :  { %990 = vmatprep.subr.mxu0 %v1903_v10 }
 0x9d2   :  { %991 = vmatpush1.msra.mxu0 %v1908_v11 }
 0x9d3   :  { %992 = vmatprep.subr.mxu0 %v1911_v12 }
 0x9d4   :  { %993 = vmatpush1.msra.mxu0 %v1915_v13 }
 0x9d5   :  { %1184 = vmatprep.subr.mxu0 %v1861_v59 }
 0xa85   :  { %v822_v52 = vpop.f32.mrf.mxu0 }
 0xa86   :  { %v827_v54 = vadd.f32 %v822_v52, %v231_v51 }
 0xa87   :  { %v824_v55 = vpop.f32.mrf.mxu0 }
 0xa88   :  { %v1496_v56 = vmul.f32 -1.442695, %v827_v54  ;;  %v828_v57 = vadd.f32 %v824_v55, %v233_v53 }
 0xa8a   :  { %v1497_v58 = vmul.f32 -1.442695, %v828_v57  ;;  %1611 = vpow2.f32 %v1496_v56 }
 0xa8c   :  { %1613 = vpow2.f32 %v1497_v58 }
 0xa97   :  { %v1612_v3 = vpop.eup %1611 }
 0xa98   :  { %v835_v15 = vadd.f32 1.0, %v1612_v3  ;;  %v243_v3 = vadd.f32 %v2050_v43, %v1850_v39 }
 0xa99   :  { %v1614_v9 = vpop.eup %1613 }
 0xa9a   :  { %v836_v14 = vadd.f32 1.0, %v1614_v9 }
 0xa9c   :  { %1615 = vrcp.f32 %v836_v14  ;;  %v245_v14 = vadd.f32 %v2052_v44, %v1852_v40 }
 0xa9d   :  { %1617 = vrcp.f32 %v835_v15 }
 0xaa9   :  { %v1616_v16 = vpop.eup %1615 }
 0xaaa   :  { %v841_v17 = vmul.f32 2.0, %v1616_v16  ;;  %v1618_v19 = vpop.eup %1617 }
 0xaab   :  { %v843_v21 = vmul.f32 %v1618_v19, %v746_v33 }
 0xaac   :  { %v1498_v18 = vadd.f32 -1.0, %v841_v17 }
 0xaae   :  { %v844_v20 = vmul.f32 %v1618_v19, %v1498_v18 }
 0xab0   :  { %846 = vrot.lane.b32.xlu1 %v844_v20, %s1788_s3 }
 0xb22   :  { %v847_v22 = vpop.permute.xlu1 %846 }
 0xb23   :  { %v849_v23 = vadd.f32 %v847_v22, %v843_v21 }
 0xb25   :  { %1619 = vtanh.f32 %v849_v23 }
 0xb32   :  { %v1620_v24 = vpop.eup %1619 }
 0xb33   :  { %v851_v25 = vmul.f32 %v1620_v24, %v1616_v16 }
 0xb35   :  { %855 = vrot.lane.b32.xlu0 %v851_v25, %s1788_s3 }
 0xba7   :  { %v856_v26 = vpop.permute.xlu0 %855 }
 0xba8   :  { %1499 = vmatmul.mubr.msk.f32.vlgmr.msra.gmra.mxu1 %vm337_vm1, %v856_v26 }
 0xba9   :  { %1082 = vmatpush1.msra.mxu1 %v1863_v60  ;;  %1129 = vmatprep.mubr.f32.mxu1 %v1787_v0 }
 0xbaa   :  { %1083 = vmatprep.subr.mxu1 %v1865_v61 }
 0xbab   :  { %1084 = vmatpush1.msra.mxu1 %v1868_v62 }
 0xbac   :  { %1085 = vmatprep.subr.mxu1 %v1872_v63 }
 0xbad   :  { %1086 = vmatpush1.msra.mxu1 %v1876_v1 }
 0xbae   :  { %1087 = vmatprep.subr.mxu1 %v1880_v2 }
 0xbaf   :  { %1088 = vmatpush1.msra.mxu1 %v1884_v4 }
 0xbb0   :  { %1089 = vmatprep.subr.mxu1 %v1887_v5 }
 0xbb1   :  { %1090 = vmatpush1.msra.mxu1 %v1891_v6 }
 0xbb2   :  { %1091 = vmatprep.subr.mxu1 %v1895_v7 }
 0xbb3   :  { %1092 = vmatpush1.msra.mxu1 %v1899_v8 }
 0xbb4   :  { %1093 = vmatprep.subr.mxu1 %v1903_v10 }
 0xbb5   :  { %1094 = vmatpush1.msra.mxu1 %v1908_v11 }
 0xbb6   :  { %1095 = vmatprep.subr.mxu1 %v1911_v12 }
 0xbb7   :  { %1096 = vmatpush1.msra.mxu1 %v1915_v13 }
 0xbb8   :  { %1287 = vmatprep.subr.mxu1 %v1861_v59 }
 0xc68   :  { %v925_v28 = vpop.f32.mrf.mxu1 }
 0xc69   :  { %v930_v30 = vadd.f32 %v925_v28, %v237_v27 }
 0xc6a   :  { %v927_v31 = vpop.f32.mrf.mxu1 }
 0xc6b   :  { %v1500_v32 = vmul.f32 -1.442695, %v930_v30  ;;  %v931_v33 = vadd.f32 %v927_v31, %v239_v29 }
 0xc6d   :  { %v1501_v34 = vmul.f32 -1.442695, %v931_v33  ;;  %1621 = vpow2.f32 %v1500_v32 }
 0xc6f   :  { %1623 = vpow2.f32 %v1501_v34 }
 0xc7a   :  { %v1622_v35 = vpop.eup %1621 }
 0xc7b   :  { %v938_v38 = vadd.f32 1.0, %v1622_v35 }
 0xc7c   :  { %v1624_v36 = vpop.eup %1623 }
 0xc7d   :  { %v939_v37 = vadd.f32 1.0, %v1624_v36 }
 0xc7f   :  { %1625 = vrcp.f32 %v939_v37 }
 0xc80   :  { %1627 = vrcp.f32 %v938_v38 }
 0xc8c   :  { %v1626_v51 = vpop.eup %1625 }
 0xc8d   :  { %v944_v59 = vmul.f32 2.0, %v1626_v51  ;;  %v1628_v41 = vpop.eup %1627 }
 0xc8e   :  { %v946_v42 = vmul.f32 %v1628_v41, %v849_v23 }
 0xc8f   :  { %v1502_v52 = vadd.f32 -1.0, %v944_v59 }
 0xc91   :  { %v947_v53 = vmul.f32 %v1628_v41, %v1502_v52  ;;  %v257_v52 = vadd.f32 %v2060_v48, %v1852_v40 }
 0xc93   :  { %949 = vrot.lane.b32.xlu1 %v947_v53, %s1788_s3 }
 0xd05   :  { %v950_v54 = vpop.permute.xlu1 %949 }
 0xd06   :  { %v952_v55 = vadd.f32 %v950_v54, %v946_v42 }
 0xd08   :  { %1629 = vtanh.f32 %v952_v55 }
 0xd15   :  { %v1630_v56 = vpop.eup %1629 }
 0xd16   :  { %v954_v57 = vmul.f32 %v1630_v56, %v1626_v51  ;;  %v255_v51 = vadd.f32 %v2058_v47, %v1850_v39 }
 0xd18   :  { %958 = vrot.lane.b32.xlu0 %v954_v57, %s1788_s3 }
 0xd8a   :  { %v959_v58 = vpop.permute.xlu0 %958 }
 0xd8b   :  { %1503 = vmatmul.mubr.msk.f32.vlgmr.msra.gmra.mxu0 %vm337_vm1, %v959_v58 }
 0xd8c   :  { %1185 = vmatpush1.msra.mxu0 %v1863_v60  ;;  %1232 = vmatprep.mubr.f32.mxu0 %v1787_v0 }
 0xd8d   :  { %1186 = vmatprep.subr.mxu0 %v1865_v61 }
 0xd8e   :  { %1187 = vmatpush1.msra.mxu0 %v1868_v62 }
 0xd8f   :  { %1188 = vmatprep.subr.mxu0 %v1872_v63 }
 0xd90   :  { %1189 = vmatpush1.msra.mxu0 %v1876_v1 }
 0xd91   :  { %1190 = vmatprep.subr.mxu0 %v1880_v2 }
 0xd92   :  { %1191 = vmatpush1.msra.mxu0 %v1884_v4 }
 0xd93   :  { %1192 = vmatprep.subr.mxu0 %v1887_v5 }
 0xd94   :  { %1193 = vmatpush1.msra.mxu0 %v1891_v6 }
 0xd95   :  { %1194 = vmatprep.subr.mxu0 %v1895_v7 }
 0xd96   :  { %1195 = vmatpush1.msra.mxu0 %v1899_v8 }
 0xd97   :  { %1196 = vmatprep.subr.mxu0 %v1903_v10 }
 0xd98   :  { %1197 = vmatpush1.msra.mxu0 %v1908_v11 }
 0xd99   :  { %1198 = vmatprep.subr.mxu0 %v1911_v12 }
 0xd9a   :  { %1199 = vmatpush1.msra.mxu0 %v1915_v13 }
 0xd9b   :  { %1530 = vmatprep.subr.mxu0 %v1787_v0 }
 0xe4b   :  { %v1028_v9 = vpop.f32.mrf.mxu0 }
 0xe4c   :  { %v1033_v15 = vadd.f32 %v1028_v9, %v243_v3 }
 0xe4d   :  { %v1030_v16 = vpop.f32.mrf.mxu0 }
 0xe4e   :  { %v1504_v17 = vmul.f32 -1.442695, %v1033_v15  ;;  %v1034_v18 = vadd.f32 %v1030_v16, %v245_v14 }
 0xe50   :  { %v1505_v19 = vmul.f32 -1.442695, %v1034_v18  ;;  %1631 = vpow2.f32 %v1504_v17 }
 0xe52   :  { %1633 = vpow2.f32 %v1505_v19 }
 0xe5d   :  { %v1632_v20 = vpop.eup %1631 }
 0xe5e   :  { %v1041_v23 = vadd.f32 1.0, %v1632_v20 }
 0xe5f   :  { %v1634_v21 = vpop.eup %1633 }
 0xe60   :  { %v1042_v22 = vadd.f32 1.0, %v1634_v21 }
 0xe62   :  { %1635 = vrcp.f32 %v1042_v22  ;;  %v261_v22 = vadd.f32 %v2062_v49, %v1850_v39 }
 0xe63   :  { %1637 = vrcp.f32 %v1041_v23 }
 0xe6f   :  { %v1636_v24 = vpop.eup %1635 }
 0xe70   :  { %v1047_v25 = vmul.f32 2.0, %v1636_v24  ;;  %v1638_v26 = vpop.eup %1637 }
 0xe71   :  { %v1049_v44 = vmul.f32 %v1638_v26, %v952_v55 }
 0xe72   :  { %v1506_v43 = vadd.f32 -1.0, %v1047_v25 }
 0xe74   :  { %v1050_v27 = vmul.f32 %v1638_v26, %v1506_v43 }
 0xe76   :  { %1052 = vrot.lane.b32.xlu1 %v1050_v27, %s1788_s3 }
 0xee8   :  { %v1053_v28 = vpop.permute.xlu1 %1052 }
 0xee9   :  { %v1055_v29 = vadd.f32 %v1053_v28, %v1049_v44 }
 0xeeb   :  { %1639 = vtanh.f32 %v1055_v29 }
 0xef8   :  { %v1640_v30 = vpop.eup %1639 }
 0xef9   :  { %v1057_v31 = vmul.f32 %v1640_v30, %v1636_v24  ;;  %v263_v24 = vadd.f32 %v2064_v50, %v1852_v40  ;;  %v1373_v50 = vld [vmem:[#allocation9 + $0x30] sm:$0xff] }
 0xefb   :  { %1061 = vrot.lane.b32.xlu0 %v1057_v31, %s1788_s3 }
 0xf6d   :  { %v1062_v32 = vpop.permute.xlu0 %1061 }
 0xf6e   :  { %1507 = vmatmul.mubr.msk.f32.vlgmr.msra.gmra.mxu1 %vm337_vm1, %v1062_v32 }
 0xf6f   :  { %1288 = vmatpush1.msra.mxu1 %v1863_v60  ;;  %1335 = vmatprep.mubr.f32.mxu1 %v1787_v0  ;;  %v249_v60 = vadd.f32 %v2054_v45, %v1850_v39 }
 0xf70   :  { %1289 = vmatprep.subr.mxu1 %v1865_v61 }
 0xf71   :  { %1290 = vmatpush1.msra.mxu1 %v1868_v62  ;;  %v251_v62 = vadd.f32 %v2056_v46, %v1852_v40  ;;  %v1374_v40 = vld [vmem:[#allocation9 + $0x38] sm:$0xff] }
 0xf72   :  { %1291 = vmatprep.subr.mxu1 %v1872_v63 }
 0xf73   :  { %1292 = vmatpush1.msra.mxu1 %v1876_v1 }
 0xf74   :  { %1293 = vmatprep.subr.mxu1 %v1880_v2 }
 0xf75   :  { %1294 = vmatpush1.msra.mxu1 %v1884_v4 }
 0xf76   :  { %1295 = vmatprep.subr.mxu1 %v1887_v5 }
 0xf77   :  { %1296 = vmatpush1.msra.mxu1 %v1891_v6 }
 0xf78   :  { %1297 = vmatprep.subr.mxu1 %v1895_v7 }
 0xf79   :  { %1298 = vmatpush1.msra.mxu1 %v1899_v8 }
 0xf7a   :  { %1299 = vmatprep.subr.mxu1 %v1903_v10 }
 0xf7b   :  { %1300 = vmatpush1.msra.mxu1 %v1908_v11 }
 0xf7c   :  { %1301 = vmatprep.subr.mxu1 %v1911_v12 }
 0xf7d   :  { %1302 = vmatpush1.msra.mxu1 %v1915_v13 }
0x102e   :  { %v1131_v61 = vpop.f32.mrf.mxu1 }
0x102f   :  { %v1136_v63 = vadd.f32 %v1131_v61, %v249_v60 }
0x1030   :  { %v1133_v1 = vpop.f32.mrf.mxu1 }
0x1031   :  { %v1508_v2 = vmul.f32 -1.442695, %v1136_v63  ;;  %v1137_v4 = vadd.f32 %v1133_v1, %v251_v62  ;;  %v1372_v62 = vld [vmem:[#allocation9 + $0x28] sm:$0xff]  ;;  %v1371_v63 = vld [vmem:[#allocation9 + $0x20] sm:$0xff]  ;;  %v1370_v1 = vld [vmem:[#allocation9 + $0x18] sm:$0xff] }
0x1033   :  { %v1509_v5 = vmul.f32 -1.442695, %v1137_v4  ;;  %1641 = vpow2.f32 %v1508_v2  ;;  %v1369_v2 = vld [vmem:[#allocation9 + $0x10] sm:$0xff]  ;;  %v1368_v4 = vld [vmem:[#allocation9 + $0x8] sm:$0xff] }
0x1035   :  { %1643 = vpow2.f32 %v1509_v5  ;;  %v1367_v5 = vld [vmem:[#allocation9] sm:$0xff] }
0x1040   :  { %v1642_v6 = vpop.eup %1641 }
0x1041   :  { %v1144_v10 = vadd.f32 1.0, %v1642_v6 }
0x1042   :  { %v1644_v7 = vpop.eup %1643 }
0x1043   :  { %v1145_v8 = vadd.f32 1.0, %v1644_v7 }
0x1045   :  { %1645 = vrcp.f32 %v1145_v8 }
0x1046   :  { %1647 = vrcp.f32 %v1144_v10 }
0x1052   :  { %v1646_v11 = vpop.eup %1645 }
0x1053   :  { %v1150_v12 = vmul.f32 2.0, %v1646_v11  ;;  %v1648_v45 = vpop.eup %1647 }
0x1054   :  { %v1152_v46 = vmul.f32 %v1648_v45, %v1055_v29 }
0x1055   :  { %v1510_v13 = vadd.f32 -1.0, %v1150_v12 }
0x1057   :  { %v1153_v33 = vmul.f32 %v1648_v45, %v1510_v13  ;;  %v1519_v13 = vld [vmem:[%s2173_s5] ss:$0 sm:$0xff] }
0x1059   :  { %1155 = vrot.lane.b32.xlu1 %v1153_v33, %s1788_s3 }
0x10cb   :  { %v1156_v34 = vpop.permute.xlu1 %1155 }
0x10cc   :  { %v1158_v35 = vadd.f32 %v1156_v34, %v1152_v46 }
0x10ce   :  { %1649 = vtanh.f32 %v1158_v35 }
0x10db   :  { %v1650_v36 = vpop.eup %1649 }
0x10dc   :  { %v1160_v37 = vmul.f32 %v1650_v36, %v1646_v11 }
0x10de   :  { %1164 = vrot.lane.b32.xlu0 %v1160_v37, %s1788_s3 }
0x1150   :  { %v1165_v38 = vpop.permute.xlu0 %1164 }
0x1151   :  { %1511 = vmatmul.mubr.msk.f32.vlgmr.msra.gmra.mxu0 %vm337_vm1, %v1165_v38 }
0x1152   :  { %1531 = vmatpush3.msra.mxu0 %v1374_v40  ;;  %1546 = vmatprep.mubr.msk.f32.mxu0 %vm1789_vm2, %v1787_v0 }
0x1153   :  { %1532 = vmatprep.subr.mxu0 %v1787_v0 }
0x1154   :  { %1533 = vmatpush3.msra.mxu0 %v1373_v50 }
0x1155   :  { %1534 = vmatprep.subr.mxu0 %v1787_v0 }
0x1156   :  { %1535 = vmatpush3.msra.mxu0 %v1372_v62 }
0x1157   :  { %1536 = vmatprep.subr.mxu0 %v1787_v0 }
0x1158   :  { %1537 = vmatpush3.msra.mxu0 %v1371_v63 }
0x1159   :  { %1538 = vmatprep.subr.mxu0 %v1787_v0 }
0x115a   :  { %1539 = vmatpush3.msra.mxu0 %v1370_v1 }
0x115b   :  { %1540 = vmatprep.subr.mxu0 %v1787_v0 }
0x115c   :  { %1541 = vmatpush3.msra.mxu0 %v1369_v2 }
0x115d   :  { %1542 = vmatprep.subr.mxu0 %v1787_v0 }
0x115e   :  { %1543 = vmatpush3.msra.mxu0 %v1368_v4 }
0x115f   :  { %1544 = vmatprep.subr.mxu0 %v1787_v0 }
0x1160   :  { %1545 = vmatpush3.msra.mxu0 %v1367_v5 }
0x1211   :  { %v1234_v59 = vpop.f32.mrf.mxu0 }
0x1212   :  { %v1239_v41 = vadd.f32 %v1234_v59, %v255_v51 }
0x1213   :  { %v1236_v53 = vpop.f32.mrf.mxu0 }
0x1214   :  { %v1512_v42 = vmul.f32 -1.442695, %v1239_v41  ;;  %v1240_v54 = vadd.f32 %v1236_v53, %v257_v52 }
0x1216   :  { %v1513_v55 = vmul.f32 -1.442695, %v1240_v54  ;;  %1651 = vpow2.f32 %v1512_v42 }
0x1218   :  { %1653 = vpow2.f32 %v1513_v55 }
0x1223   :  { %v1652_v56 = vpop.eup %1651 }
0x1224   :  { %v1247_v3 = vadd.f32 1.0, %v1652_v56 }
0x1225   :  { %v1654_v57 = vpop.eup %1653 }
0x1226   :  { %v1248_v58 = vadd.f32 1.0, %v1654_v57 }
0x1228   :  { %1655 = vrcp.f32 %v1248_v58 }
0x1229   :  { %1657 = vrcp.f32 %v1247_v3 }
0x1235   :  { %v1656_v9 = vpop.eup %1655 }
0x1236   :  { %v1253_v14 = vmul.f32 2.0, %v1656_v9  ;;  %v1658_v15 = vpop.eup %1657 }
0x1237   :  { %v1255_v48 = vmul.f32 %v1658_v15, %v1158_v35 }
0x1238   :  { %v1514_v47 = vadd.f32 -1.0, %v1253_v14 }
0x123a   :  { %v1256_v16 = vmul.f32 %v1658_v15, %v1514_v47 }
0x123c   :  { %1258 = vrot.lane.b32.xlu1 %v1256_v16, %s1788_s3 }
0x12ae   :  { %v1259_v17 = vpop.permute.xlu1 %1258 }
0x12af   :  { %v1261_v18 = vadd.f32 %v1259_v17, %v1255_v48 }
0x12b1   :  { %1659 = vtanh.f32 %v1261_v18 }
0x12be   :  { %v1660_v19 = vpop.eup %1659 }
0x12bf   :  { %v1263_v20 = vmul.f32 %v1660_v19, %v1656_v9 }
0x12c1   :  { %1267 = vrot.lane.b32.xlu0 %v1263_v20, %s1788_s3 }
0x1333   :  { %v1268_v21 = vpop.permute.xlu0 %1267 }
0x1334   :  { %1515 = vmatmul.mubr.msk.f32.vlgmr.msra.gmra.mxu1 %vm337_vm1, %v1268_v21 }
0x13f4   :  { %v1337_v23 = vpop.f32.mrf.mxu1 }
0x13f5   :  { %v1342_v25 = vadd.f32 %v1337_v23, %v261_v22 }
0x13f6   :  { %v1339_v43 = vpop.f32.mrf.mxu1 }
0x13f7   :  { %v1516_v26 = vmul.f32 -1.442695, %v1342_v25  ;;  %v1343_v27 = vadd.f32 %v1339_v43, %v263_v24 }
0x13f9   :  { %v1517_v44 = vmul.f32 -1.442695, %v1343_v27  ;;  %1661 = vpow2.f32 %v1516_v26 }
0x13fb   :  { %1663 = vpow2.f32 %v1517_v44 }
0x1406   :  { %v1662_v28 = vpop.eup %1661 }
0x1407   :  { %v1350_v31 = vadd.f32 1.0, %v1662_v28 }
0x1408   :  { %v1664_v29 = vpop.eup %1663 }
0x1409   :  { %v1351_v30 = vadd.f32 1.0, %v1664_v29 }
0x140b   :  { %1665 = vrcp.f32 %v1351_v30 }
0x140c   :  { %1667 = vrcp.f32 %v1350_v31 }
0x1418   :  { %v1666_v32 = vpop.eup %1665 }
0x1419   :  { %v1356_v60 = vmul.f32 2.0, %v1666_v32  ;;  %v1668_v49 = vpop.eup %1667 }
0x141a   :  { %v1358_v6 = vmul.f32 %v1668_v49, %v1261_v18 }
0x141b   :  { %v1518_v39 = vadd.f32 -1.0, %v1356_v60 }
0x141d   :  { %v1359_v61 = vmul.f32 %v1668_v49, %v1518_v39 }
0x141f   :  { %1361 = vrot.lane.b32.xlu1 %v1359_v61, %s1788_s3 }
0x1491   :  { %v1362_v7 = vpop.permute.xlu1 %1361 }
0x1492   :  { %v1364_v8 = vadd.f32 %v1362_v7, %v1358_v6 }
0x1494   :  { %1669 = vtanh.f32 %v1364_v8 }
0x14a1   :  { %v1670_v10 = vpop.eup %1669 }
0x14a2   :  { %v1366_v11 = vmul.f32 %v1670_v10, %v1666_v32 }
0x14a4   :  { %1383 = vrot.lane.b32.xlu0 %v1366_v11, %s1788_s3 }
0x1516   :  { %v1384_v12 = vpop.permute.xlu0 %1383 }
0x1517   :  { %1547 = vmatmul.mubr.msk.f32.vlgmr.msra.gmra.mxu0 %vm337_vm1, %v1384_v12 }
0x15d7   :  { %v1453_v45 = vpop.f32.mrf.mxu0 }
0x15d8   :  { %v1454_v0 = vadd.f32 %v1519_v13, %v1453_v45 }
0x15d9   :  { %v1548_v33 = vpop.f32.mrf.mxu0 }
0x15da   :  { %1457 = vst [vmem:[#allocation11] sm:$0xff] %v1454_v0 }
0x15db   :  { %1762 = shalt.err (!%p1759_p10)
}
0x15dc   :  { %1467 = dma.vmem_to_hbm [thread:$0]  %s1465_s22, 128, %s2174_s6, [#allocation5]  }
0x15dd   :  { %1777 = dma.done.wait [#allocation5], 128  }
0x15de   :  { %1778 = vsyncadd [#allocation5], 4294967168 }
0x15df   :  { %1471 = vsyncpa [#allocation4], 1 }
0x15e0   :  { %1472 = vsyncpa [#allocation7], 1 }
0x15e1   :  { %1473 = vsyncpa [#allocation10], 1 }
0x15e2   :  { %1474 = vsyncpa [#allocation5], 1 }

</bundles_post_ra>
